<compile_context>
chip_gen: v7x
topology: tpu7x:2x2x1
jax: 0.10.0
libtpu: 0.0.40
codegen_flags: <defaults>
</compile_context>

<pallas_src>
import jax
import jax.numpy as jnp
from jax.experimental import pallas as pl
from jax.experimental.pallas import tpu as pltpu


# ----------------------------------------------------------------------------
# Kernel 1: fused  BN1 -> ReLU -> (1x1 conv as matmul, bf16 MXU) -> BN2 -> ReLU
#   x:   (TM, Cin)  f32     flattened NHWC pixels
#   s1,b1: (1, Cin) f32     folded BN1 scale/bias
#   w1:  (Cin, Cinner) bf16 1x1 conv weight in matmul layout
#   s2,b2: (1, Cinner) f32  folded BN2 scale/bias
#   out: (TM, Cinner) bf16
# ----------------------------------------------------------------------------
def _bn_relu_mm_bn_relu_kernel(x_ref, s1_ref, b1_ref, w1_ref, s2_ref, b2_ref, o_ref):
    x = x_ref[...].astype(jnp.float32)
    h = jnp.maximum(x * s1_ref[...] + b1_ref[...], 0.0)             # BN1 + ReLU (f32 VPU)
    y = jnp.dot(h.astype(jnp.bfloat16), w1_ref[...],                # bf16 MXU, f32 acc
                preferred_element_type=jnp.float32)
    y = jnp.maximum(y * s2_ref[...] + b2_ref[...], 0.0)             # BN2 + ReLU (f32 VPU)
    o_ref[...] = y.astype(o_ref.dtype)                              # bf16 storage


def _fused_pointwise_stage(x_flat, s1, b1, w1_bf16, s2, b2, *, tile_m=1024):
    m, cin = x_flat.shape
    cinner = w1_bf16.shape[1]
    # Big tiles for the HBM roofline; no jnp.pad of x_flat — the grid uses cdiv and
    # Pallas masks the boundary block (garbage rows only feed garbage output rows,
    # which are never written back).
    tm = tile_m if m >= tile_m else m
    grid = (pl.cdiv(m, tm),)

    return pl.pallas_call(
        _bn_relu_mm_bn_relu_kernel,
        out_shape=jax.ShapeDtypeStruct((m, cinner), jnp.bfloat16),
        grid_spec=pltpu.PrefetchScalarGridSpec(
            num_scalar_prefetch=0,
            grid=grid,
            in_specs=[
                pl.BlockSpec((tm, cin), lambda i: (i, 0)),
                pl.BlockSpec((1, cin), lambda i: (0, 0)),
                pl.BlockSpec((1, cin), lambda i: (0, 0)),
                pl.BlockSpec((cin, cinner), lambda i: (0, 0)),
                pl.BlockSpec((1, cinner), lambda i: (0, 0)),
                pl.BlockSpec((1, cinner), lambda i: (0, 0)),
            ],
            out_specs=pl.BlockSpec((tm, cinner), lambda i: (i, 0)),
        ),
        compiler_params=pltpu.CompilerParams(
            dimension_semantics=("parallel",),
            vmem_limit_bytes=48 * 1024 * 1024),
    )(x_flat, s1, b1, w1_bf16, s2, b2)


# ----------------------------------------------------------------------------
# Kernel 2: row-tiled 3x3 conv (zero padding via halo rows + masks) with the
# channel concat of the original input fused into the output block.
#   x:    (1, TR, W, Cin) f32   original input rows for this tile (for the concat)
#   amid: (1, TR, W, C)  bf16   activated features, rows of this tile
#   atop: (1, 1,  W, C)  bf16   row just above the tile (masked to 0 on first tile)
#   abot: (1, 1,  W, C)  bf16   row just below the tile (masked to 0 on last tile)
#   w:    (3, C, 3*G)    bf16   w[kh][c, kw*G + g] = conv2_w[g, c, kh, kw]
#   out:  (1, TR, W, Cin+G) f32
# ----------------------------------------------------------------------------
def _conv3x3_concat_kernel(x_ref, amid_ref, atop_ref, abot_ref, w_ref, o_ref):
    _, TR, W, Cin = x_ref.shape
    C = amid_ref.shape[3]
    G = w_ref.shape[2] // 3
    bdt = amid_ref.dtype

    r = pl.program_id(1)
    nr = pl.num_programs(1)
    top_scale = (r > 0).astype(jnp.float32)        # zero-pad above the image
    bot_scale = (r < nr - 1).astype(jnp.float32)   # zero-pad below the image

    top = (atop_ref[0].astype(jnp.float32) * top_scale).astype(bdt)   # (1, W, C)
    bot = (abot_ref[0].astype(jnp.float32) * bot_scale).astype(bdt)   # (1, W, C)
    mid = amid_ref[0]                                                  # (TR, W, C)
    band = jnp.concatenate([top, mid, bot], axis=0)                    # (TR+2, W, C) bf16

    # 3 dots (one per kh), the three kw taps packed along the output dim -> fewer,
    # wider MXU pushes; bf16 operands, f32 accumulator.
    acc = jnp.zeros((TR * W, 3 * G), jnp.float32)
    for kh in range(3):
        patch = band[kh:kh + TR].reshape(TR * W, C)
        acc = acc + jnp.dot(patch, w_ref[kh], preferred_element_type=jnp.float32)

    pL = acc[:, 0 * G:1 * G].reshape(TR, W, G)   # kw=0 tap (reads input col w-1)
    pC = acc[:, 1 * G:2 * G].reshape(TR, W, G)   # kw=1 tap
    pR = acc[:, 2 * G:3 * G].reshape(TR, W, G)   # kw=2 tap (reads input col w+1)

    # Column shifts applied to the small G-wide results (not the C-wide band):
    # output col w gets pL from source col w-1 (zero at w=0) and pR from w+1
    # (zero at w=W-1), which reproduces the zero column padding.
    zc = jnp.zeros((TR, 1, G), jnp.float32)
    conv = (pC
            + jnp.concatenate([zc, pL[:, :W - 1, :]], axis=1)
            + jnp.concatenate([pR[:, 1:, :], zc], axis=1))

    # Fused channel concat via two direct sub-slice stores (no concatenated
    # (Cin+G)-wide array / lane shuffle is materialized).
    o_ref[0, :, :, :Cin] = x_ref[0]
    o_ref[0, :, :, Cin:] = conv.astype(o_ref.dtype)


def _pick_row_tile(H, max_tr=32):
    # Largest divisor of H (<= max_tr) that still leaves >= 2 row-bands, so both v7x
    # TensorCores get work even at N=1 and the (TR+2)-row band stays VMEM-friendly.
    for t in range(min(H - 1, max_tr), 0, -1):
        if H % t == 0:
            return t
    return H


def _conv3x3_concat_stage(x_nhwc, a_nhwc, w_taps):
    n, H, W, cin = x_nhwc.shape
    c = a_nhwc.shape[3]
    g3 = w_taps.shape[2]
    g = g3 // 3
    cout = cin + g
    tr = _pick_row_tile(H)
    nr = H // tr

    return pl.pallas_call(
        _conv3x3_concat_kernel,
        out_shape=jax.ShapeDtypeStruct((n, H, W, cout), jnp.float32),
        grid_spec=pltpu.PrefetchScalarGridSpec(
            num_scalar_prefetch=0,
            grid=(n, nr),
            in_specs=[
                pl.BlockSpec((1, tr, W, cin), lambda b, r: (b, r, 0, 0)),
                pl.BlockSpec((1, tr, W, c), lambda b, r: (b, r, 0, 0)),
                # halo rows: clamped at the image border, masked in-kernel
                pl.BlockSpec((1, 1, W, c),
                             lambda b, r: (b, jnp.maximum(r * tr - 1, 0), 0, 0)),
                pl.BlockSpec((1, 1, W, c),
                             lambda b, r: (b, jnp.minimum(r * tr + tr, H - 1), 0, 0)),
                pl.BlockSpec((3, c, g3), lambda b, r: (0, 0, 0)),
            ],
            out_specs=pl.BlockSpec((1, tr, W, cout), lambda b, r: (b, r, 0, 0)),
        ),
        compiler_params=pltpu.CompilerParams(
            dimension_semantics=("parallel", "parallel"),
            vmem_limit_bytes=48 * 1024 * 1024),
    )(x_nhwc, a_nhwc, a_nhwc, a_nhwc, w_taps)


# ----------------------------------------------------------------------------
# Full Bottleneck forward (NCHW in / NCHW out, like the PyTorch module).
# ----------------------------------------------------------------------------
def _fold_bn(gamma, beta, mean, var, eps=1e-5):
    scale = gamma / jnp.sqrt(var + eps)
    bias = beta - mean * scale
    return scale.astype(jnp.float32), bias.astype(jnp.float32)


@jax.jit
def bottleneck_forward(x_nchw, params):
    n, cin, H, W = x_nchw.shape
    w1 = params["conv1_w"]                      # (Cinner, Cin, 1, 1) torch layout
    w2 = params["conv2_w"]                      # (G, Cinner, 3, 3) torch layout
    cinner = w1.shape[0]
    g = w2.shape[0]

    s1, b1 = _fold_bn(params["bn1_gamma"], params["bn1_beta"],
                      params["bn1_mean"], params["bn1_var"])
    s2, b2 = _fold_bn(params["bn2_gamma"], params["bn2_beta"],
                      params["bn2_mean"], params["bn2_var"])

    # NCHW -> NHWC (interface glue)
    x_nhwc = jnp.transpose(x_nchw, (0, 2, 3, 1)).astype(jnp.float32)
    x_flat = x_nhwc.reshape(n * H * W, cin)

    # 1x1 conv weight to (Cin, Cinner) matmul layout, bf16 MXU operand.
    w1_mm = jnp.transpose(w1[:, :, 0, 0], (1, 0)).astype(jnp.bfloat16)

    a_flat = _fused_pointwise_stage(
        x_flat, s1.reshape(1, cin), b1.reshape(1, cin), w1_mm,
        s2.reshape(1, cinner), b2.reshape(1, cinner))
    a_nhwc = a_flat.reshape(n, H, W, cinner)     # bf16 inter-stage storage

    # 3x3 conv weight: (3, Cinner, 3*G) with w_taps[kh][c, kw*G + g] = w2[g, c, kh, kw]
    w2_taps = jnp.transpose(w2, (2, 1, 3, 0)).reshape(3, cinner, 3 * g).astype(jnp.bfloat16)

    # 3x3 conv + channel concat with x, fused in one kernel
    cat_nhwc = _conv3x3_concat_stage(x_nhwc, a_nhwc, w2_taps)

    # single NHWC -> NCHW transpose at the end (interface glue)
    return jnp.transpose(cat_nhwc, (0, 3, 1, 2))


# ----------------------------------------------------------------------------
# Pure-JAX reference (same eval-mode BN semantics, full f32) for a correctness check.
# ----------------------------------------------------------------------------
def bottleneck_reference(x_nchw, params):
    s1, b1 = _fold_bn(params["bn1_gamma"], params["bn1_beta"],
                      params["bn1_mean"], params["bn1_var"])
    s2, b2 = _fold_bn(params["bn2_gamma"], params["bn2_beta"],
                      params["bn2_mean"], params["bn2_var"])
    x = x_nchw.astype(jnp.float32)
    h = jnp.maximum(x * s1[None, :, None, None] + b1[None, :, None, None], 0.0)
    y = jax.lax.conv_general_dilated(
        h, params["conv1_w"].astype(jnp.float32), (1, 1), "VALID",
        dimension_numbers=("NCHW", "OIHW", "NCHW"))
    y = jnp.maximum(y * s2[None, :, None, None] + b2[None, :, None, None], 0.0)
    out = jax.lax.conv_general_dilated(
        y, params["conv2_w"].astype(jnp.float32), (1, 1), ((1, 1), (1, 1)),
        dimension_numbers=("NCHW", "OIHW", "NCHW"))
    return jnp.concatenate([x, out], axis=1)


if __name__ == "__main__":
    # Small shapes consistent with the module: N=2, in_channels=4, H=W=16,
    # growth_rate=8 -> inner_channel = 32.
    N, CIN, H, W = 2, 4, 16, 16
    GROWTH = 8
    CINNER = 4 * GROWTH

    key = jax.random.PRNGKey(0)
    k_x, k_w1, k_w2, k_g1, k_g2, k_m1, k_m2 = jax.random.split(key, 7)

    x = jax.random.normal(k_x, (N, CIN, H, W), dtype=jnp.float32)

    params = {
        # Conv weights (torch layouts): conv1 (Cinner, Cin, 1, 1), conv2 (G, Cinner, 3, 3)
        "conv1_w": 0.1 * jax.random.normal(k_w1, (CINNER, CIN, 1, 1), dtype=jnp.float32),
        "conv2_w": 0.1 * jax.random.normal(k_w2, (GROWTH, CINNER, 3, 3), dtype=jnp.float32),
        # BatchNorm params (eval-mode running stats; deterministic, non-trivial)
        "bn1_gamma": 1.0 + 0.1 * jax.random.normal(k_g1, (CIN,), dtype=jnp.float32),
        "bn1_beta": 0.05 * jnp.arange(CIN, dtype=jnp.float32),
        "bn1_mean": 0.1 * jax.random.normal(k_m1, (CIN,), dtype=jnp.float32),
        "bn1_var": jnp.ones((CIN,), dtype=jnp.float32) * 0.9,
        "bn2_gamma": 1.0 + 0.1 * jax.random.normal(k_g2, (CINNER,), dtype=jnp.float32),
        "bn2_beta": 0.01 * jnp.arange(CINNER, dtype=jnp.float32),
        "bn2_mean": 0.1 * jax.random.normal(k_m2, (CINNER,), dtype=jnp.float32),
        "bn2_var": jnp.ones((CINNER,), dtype=jnp.float32) * 1.1,
    }

    out = bottleneck_forward(x, params)
    out = jax.block_until_ready(out)
    assert out.shape == (N, CIN + GROWTH, H, W), out.shape

    ref = jax.block_until_ready(bottleneck_reference(x, params))
    # bf16 MXU operands / bf16 inter-stage storage vs a pure-f32 reference:
    # tolerance loosened accordingly (structural bugs would be orders larger).
    err = float(jnp.max(jnp.abs(out - ref)))
    assert jnp.allclose(out, ref, atol=5e-2, rtol=5e-2), err

    print("KERNEL_OK")
</pallas_src>

<mosaic_0001>
module attributes {stable_mosaic.version = 11 : i64} {
  func.func @_conv3x3_concat_kernel(%arg0: i32, %arg1: i32, %arg2: memref<1x8x16x4xf32, #tpu.memory_space<vmem>>, %arg3: memref<1x8x16x32xbf16, #tpu.memory_space<vmem>>, %arg4: memref<1x1x16x32xbf16, #tpu.memory_space<vmem>>, %arg5: memref<1x1x16x32xbf16, #tpu.memory_space<vmem>>, %arg6: memref<3x32x24xbf16, #tpu.memory_space<vmem>>, %arg7: memref<1x8x16x12xf32, #tpu.memory_space<vmem>>) attributes {dimension_semantics = [#tpu.dimension_semantics<parallel>, #tpu.dimension_semantics<parallel>], iteration_bounds = array<i64: 2, 2>, scalar_prefetch = 0 : i64, scratch_operands = 0 : i64, tpu.core_type = #tpu.core_type<tc>, window_params = [{transform_indices = @transform_0, window_bounds = array<i64: 1, 8, 16, 4>}, {transform_indices = @transform_1, window_bounds = array<i64: 1, 8, 16, 32>}, {transform_indices = @transform_2, window_bounds = array<i64: 1, 1, 16, 32>}, {transform_indices = @transform_3, window_bounds = array<i64: 1, 1, 16, 32>}, {pipeline_mode = #tpu.pipeline_mode<synchronous>, transform_indices = @transform_4, window_bounds = array<i64: 3, 32, 24>}, {transform_indices = @transform_5, window_bounds = array<i64: 1, 8, 16, 12>}]} {
    %c0_i32 = arith.constant 0 : i32
    %0 = arith.cmpi sgt, %arg1, %c0_i32 : i32
    %1 = arith.extui %0 : i1 to i32
    %2 = arith.sitofp %1 : i32 to f32
    %c1_i32 = arith.constant 1 : i32
    %3 = arith.cmpi slt, %arg1, %c1_i32 : i32
    %4 = arith.extui %3 : i1 to i32
    %5 = arith.sitofp %4 : i32 to f32
    %c0 = arith.constant 0 : index
    %c0_0 = arith.constant 0 : index
    %c0_1 = arith.constant 0 : index
    %c0_2 = arith.constant 0 : index
    %6 = vector.load %arg4[%c0, %c0_0, %c0_1, %c0_2] : memref<1x1x16x32xbf16, #tpu.memory_space<vmem>>, vector<1x1x16x32xbf16>
    %7 = vector.shape_cast %6 : vector<1x1x16x32xbf16> to vector<1x16x32xbf16>
    %8 = arith.extf %7 : vector<1x16x32xbf16> to vector<1x16x32xf32>
    %9 = vector.broadcast %2 : f32 to vector<1x16x32xf32>
    %10 = arith.mulf %8, %9 : vector<1x16x32xf32>
    %11 = arith.truncf %10 : vector<1x16x32xf32> to vector<1x16x32xbf16>
    %c0_3 = arith.constant 0 : index
    %c0_4 = arith.constant 0 : index
    %c0_5 = arith.constant 0 : index
    %c0_6 = arith.constant 0 : index
    %12 = vector.load %arg5[%c0_3, %c0_4, %c0_5, %c0_6] : memref<1x1x16x32xbf16, #tpu.memory_space<vmem>>, vector<1x1x16x32xbf16>
    %13 = vector.shape_cast %12 : vector<1x1x16x32xbf16> to vector<1x16x32xbf16>
    %14 = arith.extf %13 : vector<1x16x32xbf16> to vector<1x16x32xf32>
    %15 = vector.broadcast %5 : f32 to vector<1x16x32xf32>
    %16 = arith.mulf %14, %15 : vector<1x16x32xf32>
    %17 = arith.truncf %16 : vector<1x16x32xf32> to vector<1x16x32xbf16>
    %c0_7 = arith.constant 0 : index
    %c0_8 = arith.constant 0 : index
    %c0_9 = arith.constant 0 : index
    %c0_10 = arith.constant 0 : index
    %18 = vector.load %arg3[%c0_7, %c0_8, %c0_9, %c0_10] : memref<1x8x16x32xbf16, #tpu.memory_space<vmem>>, vector<1x8x16x32xbf16>
    %19 = vector.shape_cast %18 : vector<1x8x16x32xbf16> to vector<8x16x32xbf16>
    %20 = tpu.concatenate %11, %19, %17 in 0 : vector<1x16x32xbf16>, vector<8x16x32xbf16>, vector<1x16x32xbf16> -> vector<10x16x32xbf16>
    %cst = arith.constant 0.000000e+00 : f32
    %21 = vector.broadcast %cst : f32 to vector<128x24xf32>
    %22 = vector.extract_strided_slice %20 {offsets = [0, 0, 0], sizes = [8, 16, 32], strides = [1, 1, 1]} : vector<10x16x32xbf16> to vector<8x16x32xbf16>
    %23 = vector.shape_cast %22 : vector<8x16x32xbf16> to vector<128x32xbf16>
    %c0_11 = arith.constant 0 : index
    %c0_12 = arith.constant 0 : index
    %c0_13 = arith.constant 0 : index
    %24 = vector.load %arg6[%c0_11, %c0_12, %c0_13] : memref<3x32x24xbf16, #tpu.memory_space<vmem>>, vector<1x32x24xbf16>
    %25 = vector.shape_cast %24 : vector<1x32x24xbf16> to vector<32x24xbf16>
    %cst_14 = arith.constant dense<0.000000e+00> : vector<128x24xf32>
    %26 = tpu.matmul %23, %25, %cst_14 {dimension_numbers = #tpu.dot_dimension_numbers<[1], [0], [0], [1], [0, 0, 1, 1], [], []>} : vector<128x32xbf16>, vector<32x24xbf16>, vector<128x24xf32> -> vector<128x24xf32>
    %27 = arith.addf %21, %26 : vector<128x24xf32>
    %28 = vector.extract_strided_slice %20 {offsets = [1, 0, 0], sizes = [8, 16, 32], strides = [1, 1, 1]} : vector<10x16x32xbf16> to vector<8x16x32xbf16>
    %29 = vector.shape_cast %28 : vector<8x16x32xbf16> to vector<128x32xbf16>
    %c1 = arith.constant 1 : index
    %c0_15 = arith.constant 0 : index
    %c0_16 = arith.constant 0 : index
    %30 = vector.load %arg6[%c1, %c0_15, %c0_16] : memref<3x32x24xbf16, #tpu.memory_space<vmem>>, vector<1x32x24xbf16>
    %31 = vector.shape_cast %30 : vector<1x32x24xbf16> to vector<32x24xbf16>
    %cst_17 = arith.constant dense<0.000000e+00> : vector<128x24xf32>
    %32 = tpu.matmul %29, %31, %cst_17 {dimension_numbers = #tpu.dot_dimension_numbers<[1], [0], [0], [1], [0, 0, 1, 1], [], []>} : vector<128x32xbf16>, vector<32x24xbf16>, vector<128x24xf32> -> vector<128x24xf32>
    %33 = arith.addf %27, %32 : vector<128x24xf32>
    %34 = vector.extract_strided_slice %20 {offsets = [2, 0, 0], sizes = [8, 16, 32], strides = [1, 1, 1]} : vector<10x16x32xbf16> to vector<8x16x32xbf16>
    %35 = vector.shape_cast %34 : vector<8x16x32xbf16> to vector<128x32xbf16>
    %c2 = arith.constant 2 : index
    %c0_18 = arith.constant 0 : index
    %c0_19 = arith.constant 0 : index
    %36 = vector.load %arg6[%c2, %c0_18, %c0_19] : memref<3x32x24xbf16, #tpu.memory_space<vmem>>, vector<1x32x24xbf16>
    %37 = vector.shape_cast %36 : vector<1x32x24xbf16> to vector<32x24xbf16>
    %cst_20 = arith.constant dense<0.000000e+00> : vector<128x24xf32>
    %38 = tpu.matmul %35, %37, %cst_20 {dimension_numbers = #tpu.dot_dimension_numbers<[1], [0], [0], [1], [0, 0, 1, 1], [], []>} : vector<128x32xbf16>, vector<32x24xbf16>, vector<128x24xf32> -> vector<128x24xf32>
    %39 = arith.addf %33, %38 : vector<128x24xf32>
    %40 = vector.extract_strided_slice %39 {offsets = [0, 0], sizes = [128, 8], strides = [1, 1]} : vector<128x24xf32> to vector<128x8xf32>
    %41 = vector.shape_cast %40 : vector<128x8xf32> to vector<8x16x8xf32>
    %42 = vector.extract_strided_slice %39 {offsets = [0, 8], sizes = [128, 8], strides = [1, 1]} : vector<128x24xf32> to vector<128x8xf32>
    %43 = vector.shape_cast %42 : vector<128x8xf32> to vector<8x16x8xf32>
    %44 = vector.extract_strided_slice %39 {offsets = [0, 16], sizes = [128, 8], strides = [1, 1]} : vector<128x24xf32> to vector<128x8xf32>
    %45 = vector.shape_cast %44 : vector<128x8xf32> to vector<8x16x8xf32>
    %cst_21 = arith.constant 0.000000e+00 : f32
    %46 = vector.broadcast %cst_21 : f32 to vector<8x1x8xf32>
    %47 = vector.extract_strided_slice %41 {offsets = [0, 0, 0], sizes = [8, 15, 8], strides = [1, 1, 1]} : vector<8x16x8xf32> to vector<8x15x8xf32>
    %48 = tpu.concatenate %46, %47 in 1 : vector<8x1x8xf32>, vector<8x15x8xf32> -> vector<8x16x8xf32>
    %49 = arith.addf %43, %48 : vector<8x16x8xf32>
    %50 = vector.extract_strided_slice %45 {offsets = [0, 1, 0], sizes = [8, 15, 8], strides = [1, 1, 1]} : vector<8x16x8xf32> to vector<8x15x8xf32>
    %51 = tpu.concatenate %50, %46 in 1 : vector<8x15x8xf32>, vector<8x1x8xf32> -> vector<8x16x8xf32>
    %52 = arith.addf %49, %51 : vector<8x16x8xf32>
    %c0_22 = arith.constant 0 : index
    %c0_23 = arith.constant 0 : index
    %c0_24 = arith.constant 0 : index
    %c0_25 = arith.constant 0 : index
    %53 = vector.load %arg2[%c0_22, %c0_23, %c0_24, %c0_25] : memref<1x8x16x4xf32, #tpu.memory_space<vmem>>, vector<1x8x16x4xf32>
    %54 = vector.shape_cast %53 : vector<1x8x16x4xf32> to vector<8x16x4xf32>
    %c0_26 = arith.constant 0 : index
    %c0_27 = arith.constant 0 : index
    %c0_28 = arith.constant 0 : index
    %c0_29 = arith.constant 0 : index
    %55 = vector.load %arg7[%c0_26, %c0_27, %c0_28, %c0_29] : memref<1x8x16x12xf32, #tpu.memory_space<vmem>>, vector<1x8x16x4xf32>
    %56 = vector.shape_cast %55 : vector<1x8x16x4xf32> to vector<8x16x4xf32>
    %57 = vector.shape_cast %54 : vector<8x16x4xf32> to vector<1x8x16x4xf32>
    tpu.vector_store %arg7[%c0_26, %c0_27, %c0_28, %c0_29], %57 {strides = array<i32>} : memref<1x8x16x12xf32, #tpu.memory_space<vmem>>, vector<1x8x16x4xf32>,
    %c0_30 = arith.constant 0 : index
    %c0_31 = arith.constant 0 : index
    %c0_32 = arith.constant 0 : index
    %c4 = arith.constant 4 : index
    %58 = vector.load %arg7[%c0_30, %c0_31, %c0_32, %c4] : memref<1x8x16x12xf32, #tpu.memory_space<vmem>>, vector<1x8x16x8xf32>
    %59 = vector.shape_cast %58 : vector<1x8x16x8xf32> to vector<8x16x8xf32>
    %60 = vector.shape_cast %52 : vector<8x16x8xf32> to vector<1x8x16x8xf32>
    tpu.vector_store %arg7[%c0_30, %c0_31, %c0_32, %c4], %60 {strides = array<i32>} : memref<1x8x16x12xf32, #tpu.memory_space<vmem>>, vector<1x8x16x8xf32>,
    return
  }
  func.func @transform_0(%arg0: i32, %arg1: i32) -> (i32, i32, i32, i32) {
    %c0_i32 = arith.constant 0 : i32
    %c0_i32_0 = arith.constant 0 : i32
    %c0_i32_1 = arith.constant 0 : i32
    return %arg0, %arg1, %c0_i32, %c0_i32_0 : i32, i32, i32, i32
  }
  func.func @transform_1(%arg0: i32, %arg1: i32) -> (i32, i32, i32, i32) {
    %c0_i32 = arith.constant 0 : i32
    %c0_i32_0 = arith.constant 0 : i32
    %c0_i32_1 = arith.constant 0 : i32
    return %arg0, %arg1, %c0_i32, %c0_i32_0 : i32, i32, i32, i32
  }
  func.func @transform_2(%arg0: i32, %arg1: i32) -> (i32, i32, i32, i32) {
    %c8_i32 = arith.constant 8 : i32
    %0 = arith.muli %arg1, %c8_i32 : i32
    %c1_i32 = arith.constant 1 : i32
    %1 = arith.subi %0, %c1_i32 : i32
    %c0_i32 = arith.constant 0 : i32
    %2 = arith.maxsi %1, %c0_i32 : i32
    %c0_i32_0 = arith.constant 0 : i32
    %c0_i32_1 = arith.constant 0 : i32
    %c0_i32_2 = arith.constant 0 : i32
    return %arg0, %2, %c0_i32_0, %c0_i32_1 : i32, i32, i32, i32
  }
  func.func @transform_3(%arg0: i32, %arg1: i32) -> (i32, i32, i32, i32) {
    %c8_i32 = arith.constant 8 : i32
    %0 = arith.muli %arg1, %c8_i32 : i32
    %c8_i32_0 = arith.constant 8 : i32
    %1 = arith.addi %0, %c8_i32_0 : i32
    %c15_i32 = arith.constant 15 : i32
    %2 = arith.minsi %1, %c15_i32 : i32
    %c0_i32 = arith.constant 0 : i32
    %c0_i32_1 = arith.constant 0 : i32
    %c0_i32_2 = arith.constant 0 : i32
    return %arg0, %2, %c0_i32, %c0_i32_1 : i32, i32, i32, i32
  }
  func.func @transform_4(%arg0: i32, %arg1: i32) -> (i32, i32, i32) {
    %c0_i32 = arith.constant 0 : i32
    %c0_i32_0 = arith.constant 0 : i32
    %c0_i32_1 = arith.constant 0 : i32
    %c0_i32_2 = arith.constant 0 : i32
    return %c0_i32, %c0_i32_0, %c0_i32_1 : i32, i32, i32
  }
  func.func @transform_5(%arg0: i32, %arg1: i32) -> (i32, i32, i32, i32) {
    %c0_i32 = arith.constant 0 : i32
    %c0_i32_0 = arith.constant 0 : i32
    %c0_i32_1 = arith.constant 0 : i32
    return %arg0, %arg1, %c0_i32, %c0_i32_0 : i32, i32, i32, i32
  }
}

module attributes {stable_mosaic.version = 11 : i64} {
  func.func @_bn_relu_mm_bn_relu_kernel(%arg0: i32, %arg1: memref<512x4xf32, #tpu.memory_space<vmem>>, %arg2: memref<1x4xf32, #tpu.memory_space<vmem>>, %arg3: memref<1x4xf32, #tpu.memory_space<vmem>>, %arg4: memref<4x32xbf16, #tpu.memory_space<vmem>>, %arg5: memref<1x32xf32, #tpu.memory_space<vmem>>, %arg6: memref<1x32xf32, #tpu.memory_space<vmem>>, %arg7: memref<512x32xbf16, #tpu.memory_space<vmem>>) attributes {dimension_semantics = [#tpu.dimension_semantics<parallel>], iteration_bounds = array<i64: 1>, scalar_prefetch = 0 : i64, scratch_operands = 0 : i64, tpu.core_type = #tpu.core_type<tc>, window_params = [{transform_indices = @transform_0, window_bounds = array<i64: 512, 4>}, {pipeline_mode = #tpu.pipeline_mode<synchronous>, transform_indices = @transform_1, window_bounds = array<i64: 1, 4>}, {pipeline_mode = #tpu.pipeline_mode<synchronous>, transform_indices = @transform_2, window_bounds = array<i64: 1, 4>}, {pipeline_mode = #tpu.pipeline_mode<synchronous>, transform_indices = @transform_3, window_bounds = array<i64: 4, 32>}, {pipeline_mode = #tpu.pipeline_mode<synchronous>, transform_indices = @transform_4, window_bounds = array<i64: 1, 32>}, {pipeline_mode = #tpu.pipeline_mode<synchronous>, transform_indices = @transform_5, window_bounds = array<i64: 1, 32>}, {transform_indices = @transform_6, window_bounds = array<i64: 512, 32>}]} {
    %c0 = arith.constant 0 : index
    %c0_0 = arith.constant 0 : index
    %0 = vector.load %arg1[%c0, %c0_0] : memref<512x4xf32, #tpu.memory_space<vmem>>, vector<512x4xf32>
    %c0_1 = arith.constant 0 : index
    %c0_2 = arith.constant 0 : index
    %1 = vector.load %arg2[%c0_1, %c0_2] : memref<1x4xf32, #tpu.memory_space<vmem>>, vector<1x4xf32>
    %2 = vector.broadcast %1 : vector<1x4xf32> to vector<512x4xf32>
    %3 = arith.mulf %0, %2 : vector<512x4xf32>
    %c0_3 = arith.constant 0 : index
    %c0_4 = arith.constant 0 : index
    %4 = vector.load %arg3[%c0_3, %c0_4] : memref<1x4xf32, #tpu.memory_space<vmem>>, vector<1x4xf32>
    %5 = vector.broadcast %4 : vector<1x4xf32> to vector<512x4xf32>
    %6 = arith.addf %3, %5 : vector<512x4xf32>
    %cst = arith.constant 0.000000e+00 : f32
    %7 = vector.broadcast %cst : f32 to vector<512x4xf32>
    %8 = arith.maximumf %6, %7 : vector<512x4xf32>
    %9 = arith.truncf %8 : vector<512x4xf32> to vector<512x4xbf16>
    %c0_5 = arith.constant 0 : index
    %c0_6 = arith.constant 0 : index
    %10 = vector.load %arg4[%c0_5, %c0_6] : memref<4x32xbf16, #tpu.memory_space<vmem>>, vector<4x32xbf16>
    %cst_7 = arith.constant dense<0.000000e+00> : vector<512x32xf32>
    %11 = tpu.matmul %9, %10, %cst_7 {dimension_numbers = #tpu.dot_dimension_numbers<[1], [0], [0], [1], [0, 0, 1, 1], [], []>} : vector<512x4xbf16>, vector<4x32xbf16>, vector<512x32xf32> -> vector<512x32xf32>
    %c0_8 = arith.constant 0 : index
    %c0_9 = arith.constant 0 : index
    %12 = vector.load %arg5[%c0_8, %c0_9] : memref<1x32xf32, #tpu.memory_space<vmem>>, vector<1x32xf32>
    %13 = vector.broadcast %12 : vector<1x32xf32> to vector<512x32xf32>
    %14 = arith.mulf %11, %13 : vector<512x32xf32>
    %c0_10 = arith.constant 0 : index
    %c0_11 = arith.constant 0 : index
    %15 = vector.load %arg6[%c0_10, %c0_11] : memref<1x32xf32, #tpu.memory_space<vmem>>, vector<1x32xf32>
    %16 = vector.broadcast %15 : vector<1x32xf32> to vector<512x32xf32>
    %17 = arith.addf %14, %16 : vector<512x32xf32>
    %cst_12 = arith.constant 0.000000e+00 : f32
    %18 = vector.broadcast %cst_12 : f32 to vector<512x32xf32>
    %19 = arith.maximumf %17, %18 : vector<512x32xf32>
    %20 = arith.truncf %19 : vector<512x32xf32> to vector<512x32xbf16>
    %c0_13 = arith.constant 0 : index
    %c0_14 = arith.constant 0 : index
    %21 = vector.load %arg7[%c0_13, %c0_14] : memref<512x32xbf16, #tpu.memory_space<vmem>>, vector<512x32xbf16>
    tpu.vector_store %arg7[%c0_13, %c0_14], %20 {strides = array<i32>} : memref<512x32xbf16, #tpu.memory_space<vmem>>, vector<512x32xbf16>,
    return
  }
  func.func @transform_0(%arg0: i32) -> (i32, i32) {
    %c0_i32 = arith.constant 0 : i32
    %c0_i32_0 = arith.constant 0 : i32
    return %arg0, %c0_i32 : i32, i32
  }
  func.func @transform_1(%arg0: i32) -> (i32, i32) {
    %c0_i32 = arith.constant 0 : i32
    %c0_i32_0 = arith.constant 0 : i32
    %c0_i32_1 = arith.constant 0 : i32
    return %c0_i32, %c0_i32_0 : i32, i32
  }
  func.func @transform_2(%arg0: i32) -> (i32, i32) {
    %c0_i32 = arith.constant 0 : i32
    %c0_i32_0 = arith.constant 0 : i32
    %c0_i32_1 = arith.constant 0 : i32
    return %c0_i32, %c0_i32_0 : i32, i32
  }
  func.func @transform_3(%arg0: i32) -> (i32, i32) {
    %c0_i32 = arith.constant 0 : i32
    %c0_i32_0 = arith.constant 0 : i32
    %c0_i32_1 = arith.constant 0 : i32
    return %c0_i32, %c0_i32_0 : i32, i32
  }
  func.func @transform_4(%arg0: i32) -> (i32, i32) {
    %c0_i32 = arith.constant 0 : i32
    %c0_i32_0 = arith.constant 0 : i32
    %c0_i32_1 = arith.constant 0 : i32
    return %c0_i32, %c0_i32_0 : i32, i32
  }
  func.func @transform_5(%arg0: i32) -> (i32, i32) {
    %c0_i32 = arith.constant 0 : i32
    %c0_i32_0 = arith.constant 0 : i32
    %c0_i32_1 = arith.constant 0 : i32
    return %c0_i32, %c0_i32_0 : i32, i32
  }
  func.func @transform_6(%arg0: i32) -> (i32, i32) {
    %c0_i32 = arith.constant 0 : i32
    %c0_i32_0 = arith.constant 0 : i32
    return %arg0, %c0_i32 : i32, i32
  }
}

</mosaic_0001>

<bundles_post_ra>
// kernel: bottleneck_forward.3
= control target key start
LH: loop header
LB: loop body
LE: loop exit
PB: predicated region body
PF: predicated region fallthrough
CT: control target
= control target key end

     0   :  { %s1771_s18 = smov 0   ;;  %s1773_s19 = smov 0   ;;  %s2147_s0 = inlined_call_operand.vmem [shape: f32[2,16,16,4], index: 0, kind: input, shape index: {}]   ;;  %s2148_s1 = inlined_call_operand.vmem [shape: bf16[2,16,16,32], index: 1, kind: input, shape index: {}, may-alias: {1,2,3}]   ;;  %s2149_s2 = inlined_call_operand.vmem [shape: bf16[2,16,16,32], index: 2, kind: input, shape index: {}, may-alias: {1,2,3}]   ;;  %s2150_s3 = inlined_call_operand.vmem [shape: bf16[2,16,16,32], index: 3, kind: input, shape index: {}, may-alias: {1,2,3}]   ;;  %s2151_s4 = inlined_call_operand.vmem [shape: bf16[3,32,24], index: 4, kind: input, shape index: {}]   ;;  %s2152_s5 = inlined_call_operand.vmem [shape: f32[2,16,16,12], index: 5, kind: output, shape index: {}]  }
   0x1   :  { %s1775_s20 = smov 0   ;;  %s1777_s21 = smov 0  }
   0x2   :  { %s1779_s22 = smov 0  }
   0x3 LB: > { %s24_s23 = sadd.s32 1, %s1728_s20  ;;  %s27_s24 = sadd.s32 1, %s1732_s21  ;;  %s1736_s22 = sphi %s1779_s22, %s15_s22   ;;  %s1732_s21 = sphi %s1777_s21, %s2156_s21   ;;  %s1728_s20 = sphi %s1775_s20, %s2155_s20   ;;  %s1724_s19 = sphi %s1773_s19, %s2154_s19   ;;  %s1720_s18 = sphi %s1771_s18, %s2153_s18  }
   0x4   : > { %p25_p0 = scmp.ge.s32.totalorder %s24_s23, 2  ;;  %p1427_p1 = scmp.ge.s32.totalorder %s1736_s22, 1 }
   0x5   : > { %p291_p2 = scmp.lt.s32.totalorder %s1736_s22, 5 }
   0x6   : > { %s2158_s23 = smov (%p25_p0, %s24_s23), 0  ;;  %s2160_s24 = smov (!%p25_p0, %s27_s24), %s1732_s21 }
   0x7   : > { %p292_p3 = pnand %p1427_p1, %p291_p2  ;;  %p29_p4 = scmp.ge.s32.totalorder %s2160_s24, 2 }
   0x8   : > { %v1684_v0 = vld [vmem:[%s2151_s4 + $0x10] sm:$0xff] (!%p292_p3)   ;;  %s1807_s27 = sshll.u32 (!%p292_p3), %s1720_s18, 3  ;;  %v1685_v1 = vld [vmem:[%s2151_s4] sm:$0xff] (!%p292_p3)   ;;  %p366_p5 = scmp.lt.s32.totalorder (!%p292_p3), %s1724_s19, 1  ;;  %v1686_v2 = vld [vmem:[%s2151_s4 + $0x18] sm:$0xff] (!%p292_p3)   ;;  %vm532_vm0 = vcmask (!%p292_p3), 261120  }
   0x9   : > { %s2162_s24 = smov (%p29_p4, %s2160_s24), 0  ;;  %295 = sbr.rel (%p292_p3) target bundleno = 560 (0x230), region = 40 }
   0xa   : > { %1545 = vmatprep.subr.bf16.mxu1 (!%p292_p3), %v1684_v0  ;;  %p368_p6 = scmp.lt.s32.totalorder (!%p292_p3), %s1807_s27, 15  ;;  %1565 = vmatprep.subr.bf16.mxu0 (!%p292_p3), %v1685_v1  ;;  %v1688_v3 = vld [vmem:[%s2151_s4 + $0x8] sm:$0xff] (!%p292_p3)   ;;  %s1437_s11 = sadd.s32 (!%p292_p3), 4294967295, %s1807_s27  ;;  %v1690_v4 = vld [vmem:[%s2151_s4 + $0x20] sm:$0xff] (!%p292_p3)   ;;  %vm915_vm1 = vcmask (!%p292_p3), 1040384   ;;  %vm1028_vm2 = vcmask (!%p292_p3), 1046528  }
   0xb   : > { %1546 = vmatpush3.bf16.msra.mxu1 (!%p292_p3), %v1684_v0  ;;  %1566 = vmatpush3.bf16.msra.mxu0 (!%p292_p3), %v1685_v1  ;;  %p389_p7 = scmp.gt.s32.totalorder (!%p292_p3), %s1437_s11, 0  ;;  %p1438_p8 = scmp.lt.s32.totalorder (!%p292_p3), %s1437_s11, 15  ;;  %v1693_v17 = vld [vmem:[%s2151_s4 + $0x28] sm:$0xff] (!%p292_p3)   ;;  %vm1157_vm3 = vcmask (!%p292_p3), 31744   ;;  %vm1238_vm4 = vcmask (!%p292_p3), 97312  }
   0xc   : > { %1547 = vmatprep.subr.bf16.mxu1 (!%p292_p3), %v1686_v2  ;;  %1567 = vmatprep.subr.bf16.mxu0 (!%p292_p3), %v1688_v3  ;;  %p433_p9 = scmp.gt.s32.totalorder (!%p292_p3), %s1720_s18, 0  ;;  %s405_s13 = sadd.s32 (!%p292_p3), 8, %s1807_s27 }
   0xd   : > { %p406_p10 = scmp.lt.s32.totalorder (!%p292_p3), %s405_s13, 15  ;;  %p436_p11 = scmp.lt.s32.totalorder (!%p292_p3), %s1720_s18, 1 }
   0xe   : > { %s1738_s18 = smov (!%p292_p3), 8  }
   0xf   : > { %1548 = vmatpush3.bf16.msra.mxu1 (!%p292_p3), %v1686_v2  ;;  %1568 = vmatpush3.bf16.msra.mxu0 (!%p292_p3), %v1688_v3 }
  0x10   : > { %s2164_s19 = smov (!%p366_p5, %s1724_s19), 1  ;;  %1605 = vmatprep.subr.bf16.mxu1 %v1685_v1  ;;  %1585 = vmatprep.subr.bf16.mxu0 %v1690_v4  ;;  %s2166_s11 = smov (!%p389_p7, %s1437_s11), 0 }
  0x11   : > { %s369_s7 = scalar_select %p368_p6, %s1807_s27, 15 }
  0x12   : > { %s1820_s10 = sshll.u32 %s2164_s19, 5  ;;  %s2168_s11 = smov (!%p1438_p8, %s2166_s11), 15 }
  0x13   : > { %s1429_s14 = sshll.u32 %s369_s7, 1  ;;  %s1443_s28 = sshll.u32 %s2168_s11, 1 }
  0x14   : > { %s1827_s15 = sadd.s32 %s1820_s10, %s1429_s14  ;;  %s397_s30 = sadd.s32 %s1443_s28, %s1820_s10 }
  0x15   : > { %s1435_s16 = sshll.u32 %s1827_s15, 2  ;;  %s1445_s6 = sshll.u32 %s397_s30, 2 }
  0x16   : > { %s1833_s25 = scalar_lea.vmem %s2148_s1, %s1435_s16  ;;  %s399_s9 = scalar_lea.vmem %s2149_s2, %s1445_s6 }
  0x17   : > { %v1687_v5 = vld [vmem:[%s1833_s25] sm:$0xff]   ;;  %v1689_v6 = vld [vmem:[%s1833_s25 + $0x8] sm:$0xff]   ;;  %s434_s26 = scalar_select %p433_p9, 1, 0  ;;  %v1691_v7 = vld [vmem:[%s1833_s25 + $0x10] sm:$0xff]  }
  0x18   : > { %1549 = vmatprep.mubr.msk.bf16.mxu1 %vm532_vm0, %v1687_v5  ;;  %v1692_v8 = vld [vmem:[%s1833_s25 + $0x18] sm:$0xff]   ;;  %v1694_v9 = vld [vmem:[%s1833_s25 + $0x20] sm:$0xff]   ;;  %v1695_v18 = vld [vmem:[%s1833_s25 + $0x28] sm:$0xff]   ;;  %s2170_s13 = smov (!%p406_p10, %s405_s13), 15 }
  0x19   : > { %1550 = vmatmul.mubr.msk.bf16.vlgmr.msra.gmra.mrb[0].mxu1 %vm532_vm0, %v1689_v6  ;;  %s435_s29 = scvt.s32.f32 %s434_s26  ;;  %v1508_v10 = vld [vmem:[%s399_s9] sm:$0xff]   ;;  %v1696_v19 = vld [vmem:[%s1833_s25 + $0x30] sm:$0xff]   ;;  %v1697_v20 = vld [vmem:[%s1833_s25 + $0x38] sm:$0xff]   ;;  %s2172_s13 = smov (!%p406_p10, %s2170_s13), 15 }
  0x1a   : > { %1607 = vmatpush3.bf16.msra.mxu1 %v1685_v1  ;;  %1553 = vmatprep.mubr.msk.bf16.mxu1 %vm532_vm0, %v1691_v7  ;;  %v1509_v12 = vunpack.c.l.bf16 %v1508_v10  ;;  %v1510_v13 = vunpack.c.h.bf16 %v1508_v10  ;;  %s1450_s27 = sshll.u32 %s2172_s13, 1 }
  0x1b   : > { %1606 = vmatprep.subr.bf16.mxu1 %v1688_v3  ;;  %v443_v11 = vstv %s435_s29  ;;  %s414_s14 = sadd.s32 %s1450_s27, %s1820_s10  ;;  %s1739_s10 = smov 120  }
  0x1c   : > { %v444_v14 = vmul.f32 %v1509_v12, %v443_v11  ;;  %v445_v15 = vmul.f32 %v1510_v13, %v443_v11  ;;  %s1452_s16 = sshll.u32 %s414_s14, 2  ;;  %s1431_s29 = sshll.u32 %s1827_s15, 3 }
  0x1d   : > { %s437_s17 = scalar_select %p436_p11, 1, 0 }
  0x1e   : > { %1608 = vmatpush3.bf16.msra.mxu1 %v1688_v3  ;;  %v446_v16 = vpack.c.bf16 %v445_v15, %v444_v14  ;;  %s416_s26 = scalar_lea.vmem %s2150_s3, %s1452_s16  ;;  %s2013_s7 = scalar_lea.vmem %s2147_s0, %s1431_s29 }
  0x1f   : > { %s438_s28 = scvt.s32.f32 %s437_s17  ;;  %v1512_v21 = vld [vmem:[%s416_s26] sm:$0xff]   ;;  %s2018_s11 = scalar_lea.vmem %s2152_s5, %s1431_s29 }
  0x20   : > { %1569 = vmatprep.mubr.msk.bf16.mxu0 %vm532_vm0, %v446_v16  ;;  %v1513_v22 = vunpack.c.l.bf16 %v1512_v21  ;;  %v1514_v23 = vunpack.c.h.bf16 %v1512_v21  ;;  %s1740_s15 = smov 124  }
  0x21   : > { %1554 = vmatmul.mubr.msk.bf16.gmra.mrb[4].mxu1 %vm532_vm0, %v1692_v8  ;;  %1570 = vmatmul.mubr.msk.bf16.vlgmr.msra.gmra.mrb[0].mxu0 %vm532_vm0, %v1687_v5  ;;  %v451_v24 = vstv %s438_s28 }
  0x22   : > { %1557 = vmatprep.mubr.msk.bf16.mxu1 %vm532_vm0, %v1694_v9  ;;  %1586 = vmatpush3.bf16.msra.mxu0 %v1690_v4  ;;  %v452_v25 = vmul.f32 %v1513_v22, %v451_v24  ;;  %v453_v26 = vmul.f32 %v1514_v23, %v451_v24 }
  0x23   : > { %1573 = vmatprep.mubr.msk.bf16.mxu0 %vm532_vm0, %v1689_v6  ;;  %1587 = vmatprep.subr.bf16.mxu0 %v1693_v17 }
  0x24   : > { %v454_v27 = vpack.c.bf16 %v453_v26, %v452_v25 }
  0x26   : > { %1588 = vmatpush3.bf16.msra.mxu0 %v1693_v17 }
  0x29   : > { %1558 = vmatmul.mubr.msk.bf16.gmra.mrb[8].mxu1 %vm532_vm0, %v1695_v18  ;;  %1574 = vmatmul.mubr.msk.bf16.gmra.mrb[4].mxu0 %vm532_vm0, %v1691_v7 }
  0x2a   : > { %1561 = vmatprep.mubr.msk.bf16.mxu1 %vm532_vm0, %v1696_v19  ;;  %1589 = vmatprep.mubr.msk.bf16.mxu0 %vm532_vm0, %v1689_v6 }
  0x31   : > { %1562 = vmatmul.mubr.msk.bf16.gmra.mrb[12].mxu1 %vm532_vm0, %v1697_v20  ;;  %1590 = vmatmul.mubr.msk.bf16.vlgmr.msra.gmra.mrb[0].mxu0 %vm532_vm0, %v1691_v7 }
  0x32   : > { %1577 = vmatprep.mubr.msk.bf16.mxu1 %vm532_vm0, %v1692_v8  ;;  %1593 = vmatprep.mubr.msk.bf16.mxu0 %vm532_vm0, %v1692_v8 }
  0x39   : > { %1578 = vmatmul.mubr.msk.bf16.vlgmr.msra.gmra.mrb[8].mxu1 %vm532_vm0, %v1694_v9  ;;  %1594 = vmatmul.mubr.msk.bf16.gmra.mrb[4].mxu0 %vm532_vm0, %v1694_v9 }
  0x3a   : > { %1581 = vmatprep.mubr.msk.bf16.mxu1 %vm532_vm0, %v1695_v18  ;;  %1597 = vmatprep.mubr.msk.bf16.mxu0 %vm532_vm0, %v1695_v18 }
  0x41   : > { %1582 = vmatmul.mubr.msk.bf16.gmra.mrb[12].mxu1 %vm532_vm0, %v1696_v19  ;;  %1598 = vmatmul.mubr.msk.bf16.gmra.mrb[8].mxu0 %vm532_vm0, %v1696_v19 }
  0x42   : > { %1601 = vmatprep.mubr.msk.bf16.mxu0 %vm532_vm0, %v1697_v20 }
  0x49   : > { %1602 = vmatmul.mubr.msk.bf16.gmra.mrb[12].mxu0 %vm532_vm0, %v454_v27 }
  0xec   : > { %v1551_v28 = vpop.f32.mrb[0].mxu1 }
  0xed   : > { %v591_v29 = vpop.f32.mrb[1].mxu1 }
  0xee   : > { %v1552_v30 = vpop.f32.mrb[2].mxu1 }
  0xef   : > { %v594_v31 = vpop.f32.mrb[3].mxu1 }
  0xf4   : > { %v1555_v32 = vpop.f32.mrb[4].mxu1 }
  0xf5   : > { %v607_v33 = vpop.f32.mrb[5].mxu1 }
  0xf6   : > { %v1556_v34 = vpop.f32.mrb[6].mxu1 }
  0xf7   : > { %v610_v35 = vpop.f32.mrb[7].mxu1 }
 0x104   : > { %v1591_v36 = vpop.f32.mrb[0].mxu0 }
 0x105   : > { %v1881_v37 = vadd.f32 %v1591_v36, %v1551_v28  ;;  %v820_v38 = vpop.f32.mrb[1].mxu0 }
 0x106   : > { %v1883_v39 = vadd.f32 %v820_v38, %v591_v29  ;;  %v1592_v40 = vpop.f32.mrb[2].mxu0 }
 0x107   : > { %v1885_v42 = vadd.f32 %v1592_v40, %v1552_v30  ;;  %v823_v43 = vpop.f32.mrb[3].mxu0  ;;  %v919_v44 = vrot.slane %v1881_v37, 7  ;;  %v1032_v54 = vrot.slane %v1881_v37, 1 }
 0x108   : > { %v1888_v46 = vadd.f32 %v823_v43, %v594_v31  ;;  %v916_v47 = vrot.slane %v1883_v39, 7  ;;  %v1029_v9 = vrot.slane %v1883_v39, 1 }
 0x109   : > { %v920_v49 = vrot.slane %v1885_v42, 7  ;;  %v949_v50 = vsel %vm915_vm1, 0.0, %v919_v44  ;;  %v1033_v52 = vrot.slane %v1885_v42, 1 }
 0x10a   : > { %968 = vrot.lane.b32.xlu1 %v949_v50, %s1738_s18  ;;  %v948_v53 = vsel %vm915_vm1, 0.0, %v916_v47  ;;  %v917_v59 = vrot.slane %v1888_v46, 7  ;;  %v1030_v6 = vrot.slane %v1888_v46, 1 }
 0x10b   : > { %964 = vrot.lane.b32.xlu0 %v948_v53, %s1738_s18  ;;  %v921_v58 = vsel %vm915_vm1, %v919_v44, %v920_v49  ;;  %v1034_v62 = vsel %vm1028_vm2, %v1032_v54, %v1033_v52  ;;  %v1062_v5 = vsel %vm1028_vm2, %v1033_v52, 0.0 }
 0x10c   : > { %v1579_v41 = vpop.f32.mrb[8].mxu1  ;;  %v1595_v55 = vpop.f32.mrb[4].mxu0  ;;  %v918_v8 = vsel %vm915_vm1, %v916_v47, %v917_v59  ;;  %v1061_v14 = vsel %vm1028_vm2, %v1030_v6, 0.0  ;;  %v1031_v18 = vsel %vm1028_vm2, %v1029_v9, %v1030_v6 }
 0x10d   : > { %v735_v45 = vpop.f32.mrb[9].mxu1  ;;  %v1898_v56 = vadd.f32 %v1595_v55, %v1555_v32  ;;  %v836_v57 = vpop.f32.mrb[5].mxu0 }
 0x10e   : > { %v1580_v48 = vpop.f32.mrb[10].mxu1  ;;  %v1902_v60 = vadd.f32 %v836_v57, %v607_v33  ;;  %v1596_v61 = vpop.f32.mrb[6].mxu0  ;;  %970 = vrot.lane.b32.xlu1 %v921_v58, %s1738_s18 }
 0x10f   : > { %v738_v51 = vpop.f32.mrb[11].mxu1  ;;  %v1906_v0 = vadd.f32 %v1596_v61, %v1556_v34  ;;  %v839_v1 = vpop.f32.mrb[7].mxu0  ;;  %1081 = vrot.lane.b32.xlu0 %v1034_v62, %s1739_s10  ;;  %v925_v15 = vrot.slane %v1898_v56, 7  ;;  %v1038_v36 = vrot.slane %v1898_v56, 1 }
 0x110   : > { %v1909_v3 = vadd.f32 %v839_v1, %v610_v35  ;;  %v922_v25 = vrot.slane %v1902_v60, 7  ;;  %v1035_v44 = vrot.slane %v1902_v60, 1 }
 0x111   : > { %v926_v11 = vrot.slane %v1906_v0, 7  ;;  %v1039_v23 = vrot.slane %v1906_v0, 1  ;;  %v951_v24 = vsel %vm915_vm1, 0.0, %v925_v15 }
 0x112   : > { %1083 = vrot.lane.b32.xlu1 %v1062_v5, %s1739_s10  ;;  %v923_v27 = vrot.slane %v1909_v3, 7  ;;  %v950_v33 = vsel %vm915_vm1, 0.0, %v922_v25 }
 0x113   : > { %966 = vrot.lane.b32.xlu0 %v918_v8, %s1738_s18  ;;  %v927_v22 = vsel %vm915_vm1, %v925_v15, %v926_v11  ;;  %v1064_v30 = vsel %vm1028_vm2, %v1039_v23, 0.0  ;;  %v1040_v43 = vsel %vm1028_vm2, %v1038_v36, %v1039_v23 }
 0x114   : > { %v1583_v63 = vpop.f32.mrb[12].mxu1  ;;  %v1599_v10 = vpop.f32.mrb[8].mxu0  ;;  %v924_v40 = vsel %vm915_vm1, %v922_v25, %v923_v27  ;;  %v1144_v25 = vld [vmem:[%s2013_s7 + $0x18] sm:$0xff]  ;;  %v1142_v27 = vld [vmem:[%s2013_s7 + $0x8] sm:$0xff] }
 0x115   : > { %v751_v2 = vpop.f32.mrb[13].mxu1  ;;  %v1918_v12 = vadd.f32 %v1599_v10, %v1579_v41  ;;  %v852_v13 = vpop.f32.mrb[9].mxu0  ;;  %v1036_v41 = vrot.slane %v1909_v3, 1  ;;  %1161 = vst.msk [vmem:[%s2018_s11 + $0x18] sm:$0xff] %vm1157_vm3, %v1144_v25  ;;  %1159 = vst.msk [vmem:[%s2018_s11 + $0x8] sm:$0xff] %vm1157_vm3, %v1142_v27 }
 0x116   : > { %v1584_v4 = vpop.f32.mrb[14].mxu1  ;;  %v1922_v16 = vadd.f32 %v852_v13, %v735_v45  ;;  %v1600_v17 = vpop.f32.mrb[10].mxu0  ;;  %1079 = vrot.lane.b32.xlu1 %v1061_v14, %s1739_s10 }
 0x117   : > { %v754_v7 = vpop.f32.mrb[15].mxu1  ;;  %v1926_v19 = vadd.f32 %v1600_v17, %v1580_v48  ;;  %v855_v20 = vpop.f32.mrb[11].mxu0  ;;  %1077 = vrot.lane.b32.xlu0 %v1031_v18, %s1739_s10  ;;  %v1063_v47 = vsel %vm1028_vm2, %v1036_v41, 0.0  ;;  %v931_v48 = vrot.slane %v1918_v12, 7  ;;  %v1037_v49 = vsel %vm1028_vm2, %v1035_v44, %v1036_v41 }
 0x118   : > { %v1929_v21 = vadd.f32 %v855_v20, %v738_v51  ;;  %v928_v53 = vrot.slane %v1922_v16, 7  ;;  %v1044_v58 = vrot.slane %v1918_v12, 1 }
 0x119   : > { %v932_v45 = vrot.slane %v1926_v19, 7  ;;  %v1045_v51 = vrot.slane %v1926_v19, 1  ;;  %v953_v52 = vsel %vm915_vm1, 0.0, %v931_v48 }
 0x11a   : > { %978 = vrot.lane.b32.xlu1 %v927_v22, %s1738_s18  ;;  %v929_v54 = vrot.slane %v1929_v21, 7  ;;  %v952_v57 = vsel %vm915_vm1, 0.0, %v928_v53  ;;  %v1042_v61 = vrot.slane %v1929_v21, 1 }
 0x11b   : > { %976 = vrot.lane.b32.xlu0 %v951_v24, %s1738_s18  ;;  %v933_v50 = vsel %vm915_vm1, %v931_v48, %v932_v45  ;;  %v1066_v55 = vsel %vm1028_vm2, %v1045_v51, 0.0  ;;  %v1046_v62 = vsel %vm1028_vm2, %v1044_v58, %v1045_v51  ;;  %v1143_v24 = vld [vmem:[%s2013_s7 + $0x10] sm:$0xff] }
 0x11c   : > { %v1603_v26 = vpop.f32.mrb[12].mxu0  ;;  %v930_v59 = vsel %vm915_vm1, %v928_v53, %v929_v54  ;;  %1160 = vst.msk [vmem:[%s2018_s11 + $0x10] sm:$0xff] %vm1157_vm3, %v1143_v24  ;;  %v1145_v54 = vld [vmem:[%s2013_s7 + $0x20] sm:$0xff]  ;;  %v1154_v24 = vld [vmem:[%s2013_s7 + $0x68] sm:$0xff] }
 0x11d   : > { %v1938_v28 = vadd.f32 %v1603_v26, %v1583_v63  ;;  %v868_v29 = vpop.f32.mrb[13].mxu0  ;;  %v1041_v63 = vrot.slane %v1922_v16, 1  ;;  %1162 = vst.msk [vmem:[%s2018_s11 + $0x20] sm:$0xff] %vm1157_vm3, %v1145_v54  ;;  %1171 = vst.msk [vmem:[%s2018_s11 + $0x68] sm:$0xff] %vm1157_vm3, %v1154_v24 }
 0x11e   : > { %v1941_v31 = vadd.f32 %v868_v29, %v751_v2  ;;  %v1604_v32 = vpop.f32.mrb[14].mxu0  ;;  %1091 = vrot.lane.b32.xlu1 %v1064_v30, %s1739_s10  ;;  %v1065_v2 = vsel %vm1028_vm2, %v1042_v61, 0.0  ;;  %v1141_v30 = vld [vmem:[%s2013_s7] sm:$0xff] }
 0x11f   : > { %v1945_v34 = vadd.f32 %v1604_v32, %v1584_v4  ;;  %v871_v35 = vpop.f32.mrb[15].mxu0  ;;  %972 = vrot.lane.b32.xlu0 %v950_v33, %s1738_s18  ;;  %v937_v4 = vrot.slane %v1938_v28, 7  ;;  %v1043_v5 = vsel %vm1028_vm2, %v1041_v63, %v1042_v61  ;;  %v1050_v20 = vrot.slane %v1938_v28, 1  ;;  %1158 = vst.msk [vmem:[%s2018_s11] sm:$0xff] %vm1157_vm3, %v1141_v30  ;;  %v1155_v30 = vld [vmem:[%s2013_s7 + $0x70] sm:$0xff] }
 0x120   : > { %v1949_v38 = vadd.f32 %v871_v35, %v754_v7  ;;  %v934_v8 = vrot.slane %v1941_v31, 7  ;;  %v1047_v14 = vrot.slane %v1941_v31, 1  ;;  %1172 = vst.msk [vmem:[%s2018_s11 + $0x70] sm:$0xff] %vm1157_vm3, %v1155_v30 }
 0x121   : > { %v938_v1 = vrot.slane %v1945_v34, 7  ;;  %v955_v9 = vsel %vm915_vm1, 0.0, %v937_v4  ;;  %v1051_v17 = vrot.slane %v1945_v34, 1 }
 0x122   : > { %974 = vrot.lane.b32.xlu1 %v924_v40, %s1738_s18  ;;  %v935_v6 = vrot.slane %v1949_v38, 7  ;;  %v1048_v11 = vrot.slane %v1949_v38, 1  ;;  %v954_v13 = vsel %vm915_vm1, 0.0, %v934_v8 }
 0x123   : > { %1089 = vrot.lane.b32.xlu0 %v1040_v43, %s1739_s10  ;;  %v939_v7 = vsel %vm915_vm1, %v937_v4, %v938_v1  ;;  %v1068_v22 = vsel %vm1028_vm2, %v1051_v17, 0.0  ;;  %v1052_v23 = vsel %vm1028_vm2, %v1050_v20, %v1051_v17  ;;  %v1148_v43 = vld [vmem:[%s2013_s7 + $0x38] sm:$0xff] }
 0x124   : > { %v936_v10 = vsel %vm915_vm1, %v934_v8, %v935_v6  ;;  %v1067_v15 = vsel %vm1028_vm2, %v1048_v11, 0.0  ;;  %v1049_v18 = vsel %vm1028_vm2, %v1047_v14, %v1048_v11  ;;  %1165 = vst.msk [vmem:[%s2018_s11 + $0x38] sm:$0xff] %vm1157_vm3, %v1148_v43 }
 0x126   : > { %1087 = vrot.lane.b32.xlu1 %v1063_v47, %s1739_s10 }
 0x127   : > { %1085 = vrot.lane.b32.xlu0 %v1037_v49, %s1739_s10 }
 0x12a   : > { %986 = vrot.lane.b32.xlu1 %v933_v50, %s1738_s18  ;;  %v1147_v50 = vld [vmem:[%s2013_s7 + $0x30] sm:$0xff] }
 0x12b   : > { %984 = vrot.lane.b32.xlu0 %v953_v52, %s1738_s18  ;;  %1164 = vst.msk [vmem:[%s2018_s11 + $0x30] sm:$0xff] %vm1157_vm3, %v1147_v50 }
 0x12e   : > { %1099 = vrot.lane.b32.xlu1 %v1066_v55, %s1739_s10 }
 0x12f   : > { %980 = vrot.lane.b32.xlu0 %v952_v57, %s1738_s18 }
 0x132   : > { %982 = vrot.lane.b32.xlu1 %v930_v59, %s1738_s18 }
 0x133   : > { %1097 = vrot.lane.b32.xlu0 %v1046_v62, %s1739_s10  ;;  %v1152_v62 = vld [vmem:[%s2013_s7 + $0x58] sm:$0xff] }
 0x134   : > { %1169 = vst.msk [vmem:[%s2018_s11 + $0x58] sm:$0xff] %vm1157_vm3, %v1152_v62 }
 0x136   : > { %1095 = vrot.lane.b32.xlu1 %v1065_v2, %s1739_s10 }
 0x137   : > { %1093 = vrot.lane.b32.xlu0 %v1043_v5, %s1739_s10 }
 0x13a   : > { %994 = vrot.lane.b32.xlu1 %v939_v7, %s1738_s18 }
 0x13b   : > { %992 = vrot.lane.b32.xlu0 %v955_v9, %s1738_s18  ;;  %v1150_v9 = vld [vmem:[%s2013_s7 + $0x48] sm:$0xff] }
 0x13c   : > { %1167 = vst.msk [vmem:[%s2018_s11 + $0x48] sm:$0xff] %vm1157_vm3, %v1150_v9 }
 0x13e   : > { %990 = vrot.lane.b32.xlu1 %v936_v10, %s1738_s18 }
 0x13f   : > { %988 = vrot.lane.b32.xlu0 %v954_v13, %s1738_s18 }
 0x142   : > { %1103 = vrot.lane.b32.xlu1 %v1067_v15, %s1739_s10 }
 0x143   : > { %1101 = vrot.lane.b32.xlu0 %v1049_v18, %s1739_s10 }
 0x146   : > { %1107 = vrot.lane.b32.xlu1 %v1068_v22, %s1739_s10 }
 0x147   : > { %1105 = vrot.lane.b32.xlu0 %v1052_v23, %s1739_s10 }
 0x17c   : > { %v969_v26 = vpop.permute.xlu1 %968 }
 0x17d   : > { %v965_v29 = vpop.permute.xlu0 %964  ;;  %v1014_v32 = vadd.f32 %v1881_v37, %v969_v26 }
 0x180   : > { %v971_v33 = vpop.permute.xlu1 %970 }
 0x181   : > { %v1082_v35 = vpop.permute.xlu0 %1081  ;;  %v1015_v40 = vadd.f32 %v1885_v42, %v971_v33  ;;  %v1012_v42 = vadd.f32 %v1883_v39, %v965_v29 }
 0x182   : > { %v1127_v36 = vadd.f32 %v1082_v35, %v1014_v32 }
 0x184   : > { %v1084_v41 = vpop.permute.xlu1 %1083  ;;  %1194 = vrot.lane.b32.xlu0 %v1127_v36, %s1740_s15 }
 0x185   : > { %v1128_v44 = vadd.f32 %v1084_v41, %v1015_v40  ;;  %v967_v45 = vpop.permute.xlu0 %966 }
 0x186   : > { %v1013_v37 = vadd.f32 %v1888_v46, %v967_v45  ;;  %v1146_v46 = vld [vmem:[%s2013_s7 + $0x28] sm:$0xff] }
 0x187   : > { %1196 = vrot.lane.b32.xlu1 %v1128_v44, %s1740_s15  ;;  %1163 = vst.msk [vmem:[%s2018_s11 + $0x28] sm:$0xff] %vm1157_vm3, %v1146_v46 }
 0x188   : > { %v1080_v47 = vpop.permute.xlu1 %1079 }
 0x189   : > { %v1126_v48 = vadd.f32 %v1080_v47, %v1013_v37  ;;  %v1078_v49 = vpop.permute.xlu0 %1077 }
 0x18a   : > { %v1125_v51 = vadd.f32 %v1078_v49, %v1012_v42 }
 0x18b   : > { %1192 = vrot.lane.b32.xlu1 %v1126_v48, %s1740_s15 }
 0x18c   : > { %v979_v52 = vpop.permute.xlu1 %978  ;;  %1190 = vrot.lane.b32.xlu0 %v1125_v51, %s1740_s15 }
 0x18d   : > { %v977_v53 = vpop.permute.xlu0 %976  ;;  %v1019_v39 = vadd.f32 %v1906_v0, %v979_v52 }
 0x18e   : > { %v1018_v59 = vadd.f32 %v1898_v56, %v977_v53  ;;  %v1151_v56 = vld [vmem:[%s2013_s7 + $0x50] sm:$0xff] }
 0x18f   : > { %1168 = vst.msk [vmem:[%s2018_s11 + $0x50] sm:$0xff] %vm1157_vm3, %v1151_v56 }
 0x190   : > { %v1092_v55 = vpop.permute.xlu1 %1091 }
 0x191   : > { %v1132_v57 = vadd.f32 %v1092_v55, %v1019_v39  ;;  %v973_v58 = vpop.permute.xlu0 %972 }
 0x192   : > { %v1016_v2 = vadd.f32 %v1902_v60, %v973_v58  ;;  %v1149_v60 = vld [vmem:[%s2013_s7 + $0x40] sm:$0xff] }
 0x193   : > { %1204 = vrot.lane.b32.xlu1 %v1132_v57, %s1740_s15  ;;  %1166 = vst.msk [vmem:[%s2018_s11 + $0x40] sm:$0xff] %vm1157_vm3, %v1149_v60 }
 0x194   : > { %v975_v61 = vpop.permute.xlu1 %974 }
 0x195   : > { %v1090_v63 = vpop.permute.xlu0 %1089  ;;  %v1017_v0 = vadd.f32 %v1909_v3, %v975_v61 }
 0x196   : > { %v1131_v1 = vadd.f32 %v1090_v63, %v1018_v59 }
 0x198   : > { %v1088_v4 = vpop.permute.xlu1 %1087  ;;  %1202 = vrot.lane.b32.xlu0 %v1131_v1, %s1740_s15 }
 0x199   : > { %v1130_v5 = vadd.f32 %v1088_v4, %v1017_v0  ;;  %v1086_v6 = vpop.permute.xlu0 %1085 }
 0x19a   : > { %v1129_v7 = vadd.f32 %v1086_v6, %v1016_v2 }
 0x19b   : > { %1200 = vrot.lane.b32.xlu1 %v1130_v5, %s1740_s15 }
 0x19c   : > { %v987_v8 = vpop.permute.xlu1 %986  ;;  %1198 = vrot.lane.b32.xlu0 %v1129_v7, %s1740_s15 }
 0x19d   : > { %v985_v10 = vpop.permute.xlu0 %984  ;;  %v1023_v3 = vadd.f32 %v1926_v19, %v987_v8 }
 0x19e   : > { %v1022_v15 = vadd.f32 %v1918_v12, %v985_v10  ;;  %v1153_v12 = vld [vmem:[%s2013_s7 + $0x60] sm:$0xff] }
 0x19f   : > { %1170 = vst.msk [vmem:[%s2018_s11 + $0x60] sm:$0xff] %vm1157_vm3, %v1153_v12 }
 0x1a0   : > { %v1100_v11 = vpop.permute.xlu1 %1099 }
 0x1a1   : > { %v1136_v13 = vadd.f32 %v1100_v11, %v1023_v3  ;;  %v981_v14 = vpop.permute.xlu0 %980 }
 0x1a2   : > { %v1020_v23 = vadd.f32 %v1922_v16, %v981_v14  ;;  %v1156_v16 = vld [vmem:[%s2013_s7 + $0x78] sm:$0xff] }
 0x1a3   : > { %1212 = vrot.lane.b32.xlu1 %v1136_v13, %s1740_s15  ;;  %1173 = vst.msk [vmem:[%s2018_s11 + $0x78] sm:$0xff] %vm1157_vm3, %v1156_v16 }
 0x1a4   : > { %v983_v17 = vpop.permute.xlu1 %982 }
 0x1a5   : > { %v1098_v18 = vpop.permute.xlu0 %1097  ;;  %v1021_v22 = vadd.f32 %v1929_v21, %v983_v17 }
 0x1a6   : > { %v1135_v20 = vadd.f32 %v1098_v18, %v1022_v15 }
 0x1a8   : > { %v1096_v19 = vpop.permute.xlu1 %1095  ;;  %1210 = vrot.lane.b32.xlu0 %v1135_v20, %s1740_s15 }
 0x1a9   : > { %v1134_v25 = vadd.f32 %v1096_v19, %v1021_v22  ;;  %v1094_v26 = vpop.permute.xlu0 %1093 }
 0x1aa   : > { %v1133_v27 = vadd.f32 %v1094_v26, %v1020_v23 }
 0x1ab   : > { %1208 = vrot.lane.b32.xlu1 %v1134_v25, %s1740_s15 }
 0x1ac   : > { %v995_v21 = vpop.permute.xlu1 %994  ;;  %1206 = vrot.lane.b32.xlu0 %v1133_v27, %s1740_s15 }
 0x1ad   : > { %v993_v29 = vpop.permute.xlu0 %992  ;;  %v1027_v45 = vadd.f32 %v1945_v34, %v995_v21 }
 0x1ae   : > { %v1026_v37 = vadd.f32 %v1938_v28, %v993_v29 }
 0x1b0   : > { %v991_v32 = vpop.permute.xlu1 %990 }
 0x1b1   : > { %v989_v33 = vpop.permute.xlu0 %988  ;;  %v1025_v35 = vadd.f32 %v1949_v38, %v991_v32 }
 0x1b2   : > { %v1024_v36 = vadd.f32 %v1941_v31, %v989_v33 }
 0x1b4   : > { %v1104_v40 = vpop.permute.xlu1 %1103 }
 0x1b5   : > { %v1138_v41 = vadd.f32 %v1104_v40, %v1025_v35  ;;  %v1102_v43 = vpop.permute.xlu0 %1101 }
 0x1b6   : > { %v1137_v44 = vadd.f32 %v1102_v43, %v1024_v36 }
 0x1b7   : > { %1216 = vrot.lane.b32.xlu1 %v1138_v41, %s1740_s15 }
 0x1b8   : > { %1214 = vrot.lane.b32.xlu0 %v1137_v44, %s1740_s15  ;;  %v1108_v42 = vpop.permute.xlu1 %1107 }
 0x1b9   : > { %v1140_v38 = vadd.f32 %v1108_v42, %v1027_v45  ;;  %v1106_v31 = vpop.permute.xlu0 %1105 }
 0x1ba   : > { %v1139_v47 = vadd.f32 %v1106_v31, %v1026_v37 }
 0x1bb   : > { %1220 = vrot.lane.b32.xlu1 %v1140_v38, %s1740_s15 }
 0x1bc   : > { %1218 = vrot.lane.b32.xlu0 %v1139_v47, %s1740_s15 }
 0x1f6   : > { %v1195_v34 = vpop.permute.xlu0 %1194 }
 0x1f7   : > { %1241 = vst.msk [vmem:[%s2018_s11 + $0x10] sm:$0xff] %vm1238_vm4, %v1195_v34 }
 0x1f9   : > { %v1197_v28 = vpop.permute.xlu1 %1196 }
 0x1fa   : > { %1242 = vst.msk [vmem:[%s2018_s11 + $0x18] sm:$0xff] %vm1238_vm4, %v1197_v28 }
 0x1fd   : > { %v1193_v48 = vpop.permute.xlu1 %1192 }
 0x1fe   : > { %1240 = vst.msk [vmem:[%s2018_s11 + $0x8] sm:$0xff] %vm1238_vm4, %v1193_v48  ;;  %v1191_v49 = vpop.permute.xlu0 %1190 }
 0x1ff   : > { %1239 = vst.msk [vmem:[%s2018_s11] sm:$0xff] %vm1238_vm4, %v1191_v49 }
 0x205   : > { %v1205_v50 = vpop.permute.xlu1 %1204 }
 0x206   : > { %1246 = vst.msk [vmem:[%s2018_s11 + $0x38] sm:$0xff] %vm1238_vm4, %v1205_v50 }
 0x20a   : > { %v1203_v51 = vpop.permute.xlu0 %1202 }
 0x20b   : > { %1245 = vst.msk [vmem:[%s2018_s11 + $0x30] sm:$0xff] %vm1238_vm4, %v1203_v51 }
 0x20d   : > { %v1201_v52 = vpop.permute.xlu1 %1200 }
 0x20e   : > { %1244 = vst.msk [vmem:[%s2018_s11 + $0x28] sm:$0xff] %vm1238_vm4, %v1201_v52  ;;  %v1199_v46 = vpop.permute.xlu0 %1198 }
 0x20f   : > { %1243 = vst.msk [vmem:[%s2018_s11 + $0x20] sm:$0xff] %vm1238_vm4, %v1199_v46 }
 0x215   : > { %v1213_v53 = vpop.permute.xlu1 %1212 }
 0x216   : > { %1250 = vst.msk [vmem:[%s2018_s11 + $0x58] sm:$0xff] %vm1238_vm4, %v1213_v53 }
 0x21a   : > { %v1211_v54 = vpop.permute.xlu0 %1210 }
 0x21b   : > { %1249 = vst.msk [vmem:[%s2018_s11 + $0x50] sm:$0xff] %vm1238_vm4, %v1211_v54 }
 0x21d   : > { %v1209_v39 = vpop.permute.xlu1 %1208 }
 0x21e   : > { %1248 = vst.msk [vmem:[%s2018_s11 + $0x48] sm:$0xff] %vm1238_vm4, %v1209_v39  ;;  %v1207_v55 = vpop.permute.xlu0 %1206 }
 0x21f   : > { %1247 = vst.msk [vmem:[%s2018_s11 + $0x40] sm:$0xff] %vm1238_vm4, %v1207_v55 }
 0x229   : > { %v1217_v57 = vpop.permute.xlu1 %1216 }
 0x22a   : > { %1252 = vst.msk [vmem:[%s2018_s11 + $0x68] sm:$0xff] %vm1238_vm4, %v1217_v57  ;;  %v1215_v58 = vpop.permute.xlu0 %1214 }
 0x22b   : > { %1251 = vst.msk [vmem:[%s2018_s11 + $0x60] sm:$0xff] %vm1238_vm4, %v1215_v58 }
 0x22d   : > { %v1221_v59 = vpop.permute.xlu1 %1220 }
 0x22e   : > { %1254 = vst.msk [vmem:[%s2018_s11 + $0x78] sm:$0xff] %vm1238_vm4, %v1221_v59  ;;  %v1219_v61 = vpop.permute.xlu0 %1218 }
 0x22f   : > { %1253 = vst.msk [vmem:[%s2018_s11 + $0x70] sm:$0xff] %vm1238_vm4, %v1219_v61 }
 0x230 PF: > { %s15_s22 = sadd.s32 1, %s1736_s22   ;;  %s2153_s18 = smov %s1728_s20 }
 0x231   : > { %p12_p12 = scmp.ge.s32.totalorder %s15_s22, 6   ;;  %s2154_s19 = smov %s1732_s21 }
 0x232   : > { %s2155_s20 = smov %s2158_s23  ;;  %s2156_s21 = smov %s2162_s24 }
 0x233   :  { %14 = sbr.rel (!%p12_p12) target bundleno = 3 (0x3), region = 81 }

// kernel: bottleneck_forward.2
= control target key start
LH: loop header
LB: loop body
LE: loop exit
PB: predicated region body
PF: predicated region fallthrough
CT: control target
= control target key end

     0   :  { %vm424_vm0 = vcmask 1041408   ;;  %vm327_vm1 = vcmask 31744   ;;  %vm1179_vm2 = vcmask 257024   ;;  %s2309_s3 = inlined_call_operand.vmem [shape: bf16[4,32], index: 3, kind: input, shape index: {}]   ;;  %s2310_s0 = inlined_call_operand.vmem [shape: f32[512,4], index: 0, kind: input, shape index: {}]   ;;  %s2311_s1 = inlined_call_operand.vmem [shape: f32[1,4], index: 1, kind: input, shape index: {}]   ;;  %s2312_s2 = inlined_call_operand.vmem [shape: f32[1,4], index: 2, kind: input, shape index: {}]   ;;  %s2313_s4 = inlined_call_operand.vmem [shape: f32[1,32], index: 4, kind: input, shape index: {}]   ;;  %s2314_s5 = inlined_call_operand.vmem [shape: f32[1,32], index: 5, kind: input, shape index: {}]   ;;  %s2315_s6 = inlined_call_operand.vmem [shape: bf16[512,32], index: 6, kind: output, shape index: {}]  }
   0x1   :  { %v326_v0 = vld [vmem:[%s2309_s3] sm:$0x3]  ;;  %v25_v2 = vld [vmem:[%s2310_s0 + $0x8] sm:$0xff]  ;;  %v26_v11 = vld [vmem:[%s2310_s0 + $0x10] sm:$0xff] }
   0x2   :  { %v24_v1 = vld [vmem:[%s2310_s0] sm:$0xff]  ;;  %1513 = vmatprep.subr.msk.bf16.mxu0 %vm424_vm0, %v326_v0  ;;  %1514 = vmatprep.subr.msk.bf16.mxu1 %vm424_vm0, %v326_v0  ;;  %v426_v3 = vsel %vm424_vm0, %v326_v0, 0  ;;  %v57_v9 = vld [vmem:[%s2310_s0 + $0x108] sm:$0xff]  ;;  %v27_v12 = vld [vmem:[%s2310_s0 + $0x18] sm:$0xff] }
   0x3   :  { %v1562_v4 = vld [vmem:[%s2311_s1] ss:$0 sm:$0xff]  ;;  %1446 = vmatpush3.bf16.msra.mxu0 %v426_v3  ;;  %1512 = vmatpush3.bf16.msra.mxu1 %v426_v3  ;;  %v58_v16 = vld [vmem:[%s2310_s0 + $0x110] sm:$0xff]  ;;  %v59_v17 = vld [vmem:[%s2310_s0 + $0x118] sm:$0xff] }
   0x4   :  { %v1567_v5 = vld [vmem:[%s2312_s2] ss:$0 sm:$0xff]  ;;  %v95_v7 = vmul.f32 %v1562_v4, %v24_v1  ;;  %v96_v8 = vmul.f32 %v1562_v4, %v25_v2  ;;  %v128_v13 = vmul.f32 %v1562_v4, %v57_v9  ;;  %v97_v14 = vmul.f32 %v1562_v4, %v26_v11  ;;  %v29_v27 = vld [vmem:[%s2310_s0 + $0x28] sm:$0xff]  ;;  %v30_v38 = vld [vmem:[%s2310_s0 + $0x30] sm:$0xff] }
   0x5   :  { %v56_v6 = vld [vmem:[%s2310_s0 + $0x100] sm:$0xff]  ;;  %v98_v15 = vmul.f32 %v1562_v4, %v27_v12  ;;  %v129_v21 = vmul.f32 %v1562_v4, %v58_v16  ;;  %v130_v25 = vmul.f32 %v1562_v4, %v59_v17  ;;  %v61_v37 = vld [vmem:[%s2310_s0 + $0x128] sm:$0xff]  ;;  %v100_v42 = vmul.f32 %v1562_v4, %v29_v27  ;;  %v31_v43 = vld [vmem:[%s2310_s0 + $0x38] sm:$0xff] }
   0x6   :  { %v127_v10 = vmul.f32 %v1562_v4, %v56_v6  ;;  %v166_v18 = vadd.f32 %v1567_v5, %v95_v7  ;;  %v167_v19 = vadd.f32 %v1567_v5, %v96_v8  ;;  %v199_v22 = vadd.f32 %v1567_v5, %v128_v13  ;;  %v28_v26 = vld [vmem:[%s2310_s0 + $0x20] sm:$0xff]  ;;  %v62_v52 = vld [vmem:[%s2310_s0 + $0x130] sm:$0xff]  ;;  %v63_v53 = vld [vmem:[%s2310_s0 + $0x138] sm:$0xff] }
   0x7   :  { %v168_v23 = vadd.f32 %v1567_v5, %v97_v14  ;;  %v169_v24 = vadd.f32 %v1567_v5, %v98_v15  ;;  %v200_v31 = vadd.f32 %v1567_v5, %v129_v21  ;;  %v60_v32 = vld [vmem:[%s2310_s0 + $0x120] sm:$0xff]  ;;  %v201_v36 = vadd.f32 %v1567_v5, %v130_v25  ;;  %v33_v62 = vld [vmem:[%s2310_s0 + $0x48] sm:$0xff]  ;;  %v34_v15 = vld [vmem:[%s2310_s0 + $0x50] sm:$0xff] }
   0x8   :  { %v198_v20 = vadd.f32 %v1567_v5, %v127_v10  ;;  %v230_v28 = vmax.f32 %v166_v18, 0.0  ;;  %v231_v29 = vmax.f32 %v167_v19, 0.0  ;;  %v263_v33 = vmax.f32 %v199_v22, 0.0  ;;  %v32_v57 = vld [vmem:[%s2310_s0 + $0x40] sm:$0xff]  ;;  %v65_v6 = vld [vmem:[%s2310_s0 + $0x148] sm:$0xff]  ;;  %v66_v21 = vld [vmem:[%s2310_s0 + $0x150] sm:$0xff] }
   0x9   :  { %v232_v34 = vmax.f32 %v168_v23, 0.0  ;;  %v233_v35 = vmax.f32 %v169_v24, 0.0  ;;  %v264_v40 = vmax.f32 %v200_v31, 0.0  ;;  %v99_v41 = vmul.f32 %v1562_v4, %v28_v26  ;;  %v64_v3 = vld [vmem:[%s2310_s0 + $0x140] sm:$0xff]  ;;  %v67_v26 = vld [vmem:[%s2310_s0 + $0x158] sm:$0xff] }
   0xa   :  { %v262_v30 = vmax.f32 %v198_v20, 0.0  ;;  %v294_v39 = vpack.c.bf16 %v231_v29, %v230_v28  ;;  %v265_v46 = vmax.f32 %v201_v36, 0.0  ;;  %v131_v47 = vmul.f32 %v1562_v4, %v60_v32  ;;  %v35_v20 = vld [vmem:[%s2310_s0 + $0x58] sm:$0xff]  ;;  %v36_v31 = vld [vmem:[%s2310_s0 + $0x60] sm:$0xff]  ;;  %v37_v36 = vld [vmem:[%s2310_s0 + $0x68] sm:$0xff] }
   0xb   :  { %v295_v45 = vpack.c.bf16 %v233_v35, %v232_v34  ;;  %v170_v48 = vadd.f32 %v1567_v5, %v99_v41  ;;  %v171_v49 = vadd.f32 %v1567_v5, %v100_v42  ;;  %v132_v50 = vmul.f32 %v1562_v4, %v61_v37  ;;  %v68_v41 = vld [vmem:[%s2310_s0 + $0x160] sm:$0xff] }
   0xc   :  { %v310_v44 = vpack.c.bf16 %v263_v33, %v262_v30  ;;  %1447 = vmatprep.mubr.msk.bf16.mxu0 %vm327_vm1, %v294_v39  ;;  %v101_v51 = vmul.f32 %v1562_v4, %v30_v38  ;;  %v311_v54 = vpack.c.bf16 %v265_v46, %v264_v40  ;;  %v202_v55 = vadd.f32 %v1567_v5, %v131_v47  ;;  %v69_v46 = vld [vmem:[%s2310_s0 + $0x168] sm:$0xff]  ;;  %v38_v47 = vld [vmem:[%s2310_s0 + $0x70] sm:$0xff] }
   0xd   :  { %1448 = vmatmul.mubr.msk.bf16.vlgmr.msra.gmra.mrb[0].mxu0 %vm327_vm1, %v295_v45  ;;  %v102_v56 = vmul.f32 %v1562_v4, %v31_v43  ;;  %v234_v58 = vmax.f32 %v170_v48, 0.0  ;;  %v235_v59 = vmax.f32 %v171_v49, 0.0  ;;  %v203_v60 = vadd.f32 %v1567_v5, %v132_v50 }
   0xe   :  { %1479 = vmatprep.mubr.msk.bf16.mxu1 %vm327_vm1, %v310_v44  ;;  %v172_v61 = vadd.f32 %v1567_v5, %v101_v51  ;;  %v266_v63 = vmax.f32 %v202_v55, 0.0  ;;  %v133_v1 = vmul.f32 %v1562_v4, %v62_v52  ;;  %v134_v2 = vmul.f32 %v1562_v4, %v63_v53  ;;  %v39_v52 = vld [vmem:[%s2310_s0 + $0x78] sm:$0xff] }
   0xf   :  { %1480 = vmatmul.mubr.msk.bf16.vlgmr.msra.gmra.mrb[0].mxu1 %vm327_vm1, %v311_v54  ;;  %v173_v0 = vadd.f32 %v1567_v5, %v102_v56  ;;  %v296_v7 = vpack.c.bf16 %v235_v59, %v234_v58  ;;  %v267_v8 = vmax.f32 %v203_v60, 0.0  ;;  %v103_v10 = vmul.f32 %v1562_v4, %v32_v57 }
  0x10   :  { %v236_v9 = vmax.f32 %v172_v61, 0.0  ;;  %v204_v12 = vadd.f32 %v1567_v5, %v133_v1  ;;  %v205_v13 = vadd.f32 %v1567_v5, %v134_v2  ;;  %v104_v14 = vmul.f32 %v1562_v4, %v33_v62  ;;  %v70_v61 = vld [vmem:[%s2310_s0 + $0x170] sm:$0xff]  ;;  %v71_v62 = vld [vmem:[%s2310_s0 + $0x178] sm:$0xff] }
  0x11   :  { %v237_v11 = vmax.f32 %v173_v0, 0.0  ;;  %1451 = vmatprep.mubr.msk.bf16.mxu0 %vm327_vm1, %v296_v7  ;;  %v312_v16 = vpack.c.bf16 %v267_v8, %v266_v63  ;;  %v174_v17 = vadd.f32 %v1567_v5, %v103_v10  ;;  %v135_v18 = vmul.f32 %v1562_v4, %v64_v3  ;;  %v40_v3 = vld [vmem:[%s2310_s0 + $0x80] sm:$0xff]  ;;  %v41_v10 = vld [vmem:[%s2310_s0 + $0x88] sm:$0xff] }
  0x12   :  { %v136_v19 = vmul.f32 %v1562_v4, %v65_v6  ;;  %v268_v23 = vmax.f32 %v204_v12, 0.0  ;;  %v269_v24 = vmax.f32 %v205_v13, 0.0  ;;  %v175_v25 = vadd.f32 %v1567_v5, %v104_v14 }
  0x13   :  { %v297_v22 = vpack.c.bf16 %v237_v11, %v236_v9  ;;  %1483 = vmatprep.mubr.msk.bf16.mxu1 %vm327_vm1, %v312_v16  ;;  %v238_v27 = vmax.f32 %v174_v17, 0.0  ;;  %v206_v28 = vadd.f32 %v1567_v5, %v135_v18  ;;  %v105_v30 = vmul.f32 %v1562_v4, %v34_v15  ;;  %v72_v15 = vld [vmem:[%s2310_s0 + $0x180] sm:$0xff]  ;;  %v73_v16 = vld [vmem:[%s2310_s0 + $0x188] sm:$0xff] }
  0x14   :  { %v207_v29 = vadd.f32 %v1567_v5, %v136_v19  ;;  %v313_v32 = vpack.c.bf16 %v269_v24, %v268_v23  ;;  %v239_v33 = vmax.f32 %v175_v25, 0.0  ;;  %v106_v34 = vmul.f32 %v1562_v4, %v35_v20  ;;  %v42_v25 = vld [vmem:[%s2310_s0 + $0x90] sm:$0xff] }
  0x15   :  { %1452 = vmatmul.mubr.msk.bf16.gmra.mrb[4].mxu0 %vm327_vm1, %v297_v22  ;;  %v137_v35 = vmul.f32 %v1562_v4, %v66_v21  ;;  %v270_v37 = vmax.f32 %v206_v28, 0.0  ;;  %v176_v39 = vadd.f32 %v1567_v5, %v105_v30  ;;  %v138_v40 = vmul.f32 %v1562_v4, %v67_v26  ;;  %v43_v30 = vld [vmem:[%s2310_s0 + $0x98] sm:$0xff] }
  0x16   :  { %v271_v38 = vmax.f32 %v207_v29, 0.0  ;;  %v298_v42 = vpack.c.bf16 %v239_v33, %v238_v27  ;;  %v177_v43 = vadd.f32 %v1567_v5, %v106_v34  ;;  %v107_v45 = vmul.f32 %v1562_v4, %v36_v31  ;;  %v74_v31 = vld [vmem:[%s2310_s0 + $0x190] sm:$0xff] }
  0x17   :  { %1484 = vmatmul.mubr.msk.bf16.gmra.mrb[4].mxu1 %vm327_vm1, %v313_v32  ;;  %v208_v44 = vadd.f32 %v1567_v5, %v137_v35  ;;  %v240_v49 = vmax.f32 %v176_v39, 0.0  ;;  %v209_v50 = vadd.f32 %v1567_v5, %v138_v40  ;;  %v108_v51 = vmul.f32 %v1562_v4, %v37_v36  ;;  %v75_v36 = vld [vmem:[%s2310_s0 + $0x198] sm:$0xff] }
  0x18   :  { %v314_v48 = vpack.c.bf16 %v271_v38, %v270_v37  ;;  %1455 = vmatprep.mubr.msk.bf16.mxu0 %vm327_vm1, %v298_v42  ;;  %v241_v53 = vmax.f32 %v177_v43, 0.0  ;;  %v178_v55 = vadd.f32 %v1567_v5, %v107_v45  ;;  %v139_v56 = vmul.f32 %v1562_v4, %v68_v41  ;;  %v44_v41 = vld [vmem:[%s2310_s0 + $0xa0] sm:$0xff] }
  0x19   :  { %v272_v54 = vmax.f32 %v208_v44, 0.0  ;;  %v273_v57 = vmax.f32 %v209_v50, 0.0  ;;  %v179_v58 = vadd.f32 %v1567_v5, %v108_v51  ;;  %v140_v59 = vmul.f32 %v1562_v4, %v69_v46  ;;  %v45_v46 = vld [vmem:[%s2310_s0 + $0xa8] sm:$0xff]  ;;  %v76_v51 = vld [vmem:[%s2310_s0 + $0x1a0] sm:$0xff] }
  0x1a   :  { %1487 = vmatprep.mubr.msk.bf16.mxu1 %vm327_vm1, %v314_v48  ;;  %v109_v60 = vmul.f32 %v1562_v4, %v38_v47  ;;  %v299_v63 = vpack.c.bf16 %v241_v53, %v240_v49  ;;  %v242_v0 = vmax.f32 %v178_v55, 0.0  ;;  %v210_v1 = vadd.f32 %v1567_v5, %v139_v56  ;;  %v77_v56 = vld [vmem:[%s2310_s0 + $0x1a8] sm:$0xff] }
  0x1b   :  { %v110_v2 = vmul.f32 %v1562_v4, %v39_v52  ;;  %v315_v6 = vpack.c.bf16 %v273_v57, %v272_v54  ;;  %v243_v7 = vmax.f32 %v179_v58, 0.0  ;;  %v211_v8 = vadd.f32 %v1567_v5, %v140_v59  ;;  %v46_v57 = vld [vmem:[%s2310_s0 + $0xb0] sm:$0xff] }
  0x1c   :  { %v180_v9 = vadd.f32 %v1567_v5, %v109_v60  ;;  %v274_v11 = vmax.f32 %v210_v1, 0.0  ;;  %v141_v13 = vmul.f32 %v1562_v4, %v70_v61  ;;  %v142_v14 = vmul.f32 %v1562_v4, %v71_v62  ;;  %v47_v62 = vld [vmem:[%s2310_s0 + $0xb8] sm:$0xff] }
  0x1d   :  { %1456 = vmatmul.mubr.msk.bf16.gmra.mrb[8].mxu0 %vm327_vm1, %v299_v63  ;;  %v181_v12 = vadd.f32 %v1567_v5, %v110_v2  ;;  %v300_v17 = vpack.c.bf16 %v243_v7, %v242_v0  ;;  %v275_v18 = vmax.f32 %v211_v8, 0.0  ;;  %v111_v20 = vmul.f32 %v1562_v4, %v40_v3 }
  0x1e   :  { %v244_v19 = vmax.f32 %v180_v9, 0.0  ;;  %v212_v22 = vadd.f32 %v1567_v5, %v141_v13  ;;  %v213_v23 = vadd.f32 %v1567_v5, %v142_v14  ;;  %v112_v24 = vmul.f32 %v1562_v4, %v41_v10  ;;  %v78_v9 = vld [vmem:[%s2310_s0 + $0x1b0] sm:$0xff]  ;;  %v79_v10 = vld [vmem:[%s2310_s0 + $0x1b8] sm:$0xff] }
  0x1f   :  { %1488 = vmatmul.mubr.msk.bf16.gmra.mrb[8].mxu1 %vm327_vm1, %v315_v6  ;;  %v245_v21 = vmax.f32 %v181_v12, 0.0  ;;  %1459 = vmatprep.mubr.msk.bf16.mxu0 %vm327_vm1, %v300_v17  ;;  %v316_v26 = vpack.c.bf16 %v275_v18, %v274_v11  ;;  %v182_v27 = vadd.f32 %v1567_v5, %v111_v20  ;;  %v143_v28 = vmul.f32 %v1562_v4, %v72_v15  ;;  %v48_v15 = vld [vmem:[%s2310_s0 + $0xc0] sm:$0xff]  ;;  %v49_v20 = vld [vmem:[%s2310_s0 + $0xc8] sm:$0xff] }
  0x20   :  { %v144_v29 = vmul.f32 %v1562_v4, %v73_v16  ;;  %v276_v33 = vmax.f32 %v212_v22, 0.0  ;;  %v277_v34 = vmax.f32 %v213_v23, 0.0  ;;  %v183_v35 = vadd.f32 %v1567_v5, %v112_v24 }
  0x21   :  { %v301_v32 = vpack.c.bf16 %v245_v21, %v244_v19  ;;  %1491 = vmatprep.mubr.msk.bf16.mxu1 %vm327_vm1, %v316_v26  ;;  %v246_v37 = vmax.f32 %v182_v27, 0.0  ;;  %v214_v38 = vadd.f32 %v1567_v5, %v143_v28  ;;  %v113_v40 = vmul.f32 %v1562_v4, %v42_v25  ;;  %v80_v25 = vld [vmem:[%s2310_s0 + $0x1c0] sm:$0xff]  ;;  %v81_v26 = vld [vmem:[%s2310_s0 + $0x1c8] sm:$0xff] }
  0x22   :  { %v215_v39 = vadd.f32 %v1567_v5, %v144_v29  ;;  %v317_v42 = vpack.c.bf16 %v277_v34, %v276_v33  ;;  %v247_v43 = vmax.f32 %v183_v35, 0.0  ;;  %v114_v44 = vmul.f32 %v1562_v4, %v43_v30  ;;  %v50_v35 = vld [vmem:[%s2310_s0 + $0xd0] sm:$0xff] }
  0x23   :  { %v145_v45 = vmul.f32 %v1562_v4, %v74_v31  ;;  %v278_v47 = vmax.f32 %v214_v38, 0.0  ;;  %v184_v49 = vadd.f32 %v1567_v5, %v113_v40  ;;  %v146_v50 = vmul.f32 %v1562_v4, %v75_v36  ;;  %v51_v40 = vld [vmem:[%s2310_s0 + $0xd8] sm:$0xff] }
  0x24   :  { %v279_v48 = vmax.f32 %v215_v39, 0.0  ;;  %v302_v52 = vpack.c.bf16 %v247_v43, %v246_v37  ;;  %v185_v53 = vadd.f32 %v1567_v5, %v114_v44  ;;  %v115_v55 = vmul.f32 %v1562_v4, %v44_v41  ;;  %v82_v41 = vld [vmem:[%s2310_s0 + $0x1d0] sm:$0xff] }
  0x25   :  { %1460 = vmatmul.mubr.msk.bf16.gmra.mrb[12].mxu0 %vm327_vm1, %v301_v32  ;;  %v216_v54 = vadd.f32 %v1567_v5, %v145_v45  ;;  %v248_v59 = vmax.f32 %v184_v49, 0.0  ;;  %v217_v60 = vadd.f32 %v1567_v5, %v146_v50  ;;  %v116_v61 = vmul.f32 %v1562_v4, %v45_v46  ;;  %v83_v46 = vld [vmem:[%s2310_s0 + $0x1d8] sm:$0xff] }
  0x26   :  { %v318_v58 = vpack.c.bf16 %v279_v48, %v278_v47  ;;  %1463 = vmatprep.mubr.msk.bf16.mxu0 %vm327_vm1, %v302_v52  ;;  %v249_v63 = vmax.f32 %v185_v53, 0.0  ;;  %v186_v1 = vadd.f32 %v1567_v5, %v115_v55  ;;  %v147_v2 = vmul.f32 %v1562_v4, %v76_v51  ;;  %v52_v51 = vld [vmem:[%s2310_s0 + $0xe0] sm:$0xff] }
  0x27   :  { %1492 = vmatmul.mubr.msk.bf16.gmra.mrb[12].mxu1 %vm327_vm1, %v317_v42  ;;  %v280_v0 = vmax.f32 %v216_v54, 0.0  ;;  %v281_v3 = vmax.f32 %v217_v60, 0.0  ;;  %v187_v6 = vadd.f32 %v1567_v5, %v116_v61  ;;  %v148_v7 = vmul.f32 %v1562_v4, %v77_v56  ;;  %v53_v56 = vld [vmem:[%s2310_s0 + $0xe8] sm:$0xff]  ;;  %v84_v61 = vld [vmem:[%s2310_s0 + $0x1e0] sm:$0xff] }
  0x28   :  { %1495 = vmatprep.mubr.msk.bf16.mxu1 %vm327_vm1, %v318_v58  ;;  %v117_v8 = vmul.f32 %v1562_v4, %v46_v57  ;;  %v303_v11 = vpack.c.bf16 %v249_v63, %v248_v59  ;;  %v250_v12 = vmax.f32 %v186_v1, 0.0  ;;  %v218_v13 = vadd.f32 %v1567_v5, %v147_v2  ;;  %v85_v2 = vld [vmem:[%s2310_s0 + $0x1e8] sm:$0xff] }
  0x29   :  { %v118_v14 = vmul.f32 %v1562_v4, %v47_v62  ;;  %v319_v16 = vpack.c.bf16 %v281_v3, %v280_v0  ;;  %v251_v17 = vmax.f32 %v187_v6, 0.0  ;;  %v219_v18 = vadd.f32 %v1567_v5, %v148_v7  ;;  %v54_v3 = vld [vmem:[%s2310_s0 + $0xf0] sm:$0xff] }
  0x2a   :  { %v188_v19 = vadd.f32 %v1567_v5, %v117_v8  ;;  %v282_v21 = vmax.f32 %v218_v13, 0.0  ;;  %v149_v23 = vmul.f32 %v1562_v4, %v78_v9  ;;  %v150_v24 = vmul.f32 %v1562_v4, %v79_v10  ;;  %v55_v10 = vld [vmem:[%s2310_s0 + $0xf8] sm:$0xff] }
  0x2b   :  { %v189_v22 = vadd.f32 %v1567_v5, %v118_v14  ;;  %v304_v27 = vpack.c.bf16 %v251_v17, %v250_v12  ;;  %v283_v28 = vmax.f32 %v219_v18, 0.0  ;;  %v119_v30 = vmul.f32 %v1562_v4, %v48_v15  ;;  %v86_v18 = vld [vmem:[%s2310_s0 + $0x1f0] sm:$0xff] }
  0x2c   :  { %v252_v29 = vmax.f32 %v188_v19, 0.0  ;;  %v220_v32 = vadd.f32 %v1567_v5, %v149_v23  ;;  %v221_v33 = vadd.f32 %v1567_v5, %v150_v24  ;;  %v120_v34 = vmul.f32 %v1562_v4, %v49_v20  ;;  %v87_v19 = vld [vmem:[%s2310_s0 + $0x1f8] sm:$0xff] }
  0x2d   :  { %1464 = vmatmul.mubr.msk.bf16.gmra.mrb[16].mxu0 %vm327_vm1, %v303_v11  ;;  %v253_v31 = vmax.f32 %v189_v22, 0.0  ;;  %v320_v36 = vpack.c.bf16 %v283_v28, %v282_v21  ;;  %v190_v37 = vadd.f32 %v1567_v5, %v119_v30  ;;  %v151_v38 = vmul.f32 %v1562_v4, %v80_v25 }
  0x2e   :  { %1467 = vmatprep.mubr.msk.bf16.mxu0 %vm327_vm1, %v304_v27  ;;  %v152_v39 = vmul.f32 %v1562_v4, %v81_v26  ;;  %v284_v43 = vmax.f32 %v220_v32, 0.0  ;;  %v285_v44 = vmax.f32 %v221_v33, 0.0  ;;  %v191_v45 = vadd.f32 %v1567_v5, %v120_v34 }
  0x2f   :  { %1496 = vmatmul.mubr.msk.bf16.gmra.mrb[16].mxu1 %vm327_vm1, %v319_v16  ;;  %v305_v42 = vpack.c.bf16 %v253_v31, %v252_v29  ;;  %v254_v47 = vmax.f32 %v190_v37, 0.0  ;;  %v222_v48 = vadd.f32 %v1567_v5, %v151_v38  ;;  %v121_v50 = vmul.f32 %v1562_v4, %v50_v35 }
  0x30   :  { %1499 = vmatprep.mubr.msk.bf16.mxu1 %vm327_vm1, %v320_v36  ;;  %v223_v49 = vadd.f32 %v1567_v5, %v152_v39  ;;  %v321_v52 = vpack.c.bf16 %v285_v44, %v284_v43  ;;  %v255_v53 = vmax.f32 %v191_v45, 0.0  ;;  %v122_v54 = vmul.f32 %v1562_v4, %v51_v40  ;;  %v1923_v44 = vld [vmem:[%s2314_s5] ss:$0 sm:$0xff] }
  0x31   :  { %v153_v55 = vmul.f32 %v1562_v4, %v82_v41  ;;  %v286_v57 = vmax.f32 %v222_v48, 0.0  ;;  %v192_v59 = vadd.f32 %v1567_v5, %v121_v50  ;;  %v154_v60 = vmul.f32 %v1562_v4, %v83_v46 }
  0x32   :  { %v287_v58 = vmax.f32 %v223_v49, 0.0  ;;  %v306_v62 = vpack.c.bf16 %v255_v53, %v254_v47  ;;  %v193_v63 = vadd.f32 %v1567_v5, %v122_v54  ;;  %v123_v1 = vmul.f32 %v1562_v4, %v52_v51 }
  0x33   :  { %v224_v0 = vadd.f32 %v1567_v5, %v153_v55  ;;  %v256_v7 = vmax.f32 %v192_v59, 0.0  ;;  %v225_v8 = vadd.f32 %v1567_v5, %v154_v60  ;;  %v124_v9 = vmul.f32 %v1562_v4, %v53_v56 }
  0x34   :  { %v322_v6 = vpack.c.bf16 %v287_v58, %v286_v57  ;;  %v257_v11 = vmax.f32 %v193_v63, 0.0  ;;  %v194_v12 = vadd.f32 %v1567_v5, %v123_v1  ;;  %v155_v13 = vmul.f32 %v1562_v4, %v84_v61 }
  0x35   :  { %1468 = vmatmul.mubr.msk.bf16.gmra.mrb[20].mxu0 %vm327_vm1, %v305_v42  ;;  %v288_v14 = vmax.f32 %v224_v0, 0.0  ;;  %v195_v15 = vadd.f32 %v1567_v5, %v124_v9  ;;  %v156_v16 = vmul.f32 %v1562_v4, %v85_v2  ;;  %v125_v17 = vmul.f32 %v1562_v4, %v54_v3 }
  0x36   :  { %1471 = vmatprep.mubr.msk.bf16.mxu0 %vm327_vm1, %v306_v62  ;;  %v289_v20 = vmax.f32 %v225_v8, 0.0  ;;  %v258_v21 = vmax.f32 %v194_v12, 0.0  ;;  %v226_v22 = vadd.f32 %v1567_v5, %v155_v13  ;;  %v126_v23 = vmul.f32 %v1562_v4, %v55_v10 }
  0x37   :  { %1500 = vmatmul.mubr.msk.bf16.gmra.mrb[20].mxu1 %vm327_vm1, %v321_v52  ;;  %v307_v24 = vpack.c.bf16 %v257_v11, %v256_v7  ;;  %v259_v25 = vmax.f32 %v195_v15, 0.0  ;;  %v227_v26 = vadd.f32 %v1567_v5, %v156_v16  ;;  %v196_v27 = vadd.f32 %v1567_v5, %v125_v17 }
  0x38   :  { %1503 = vmatprep.mubr.msk.bf16.mxu1 %vm327_vm1, %v322_v6  ;;  %v290_v28 = vmax.f32 %v226_v22, 0.0  ;;  %v197_v29 = vadd.f32 %v1567_v5, %v126_v23  ;;  %v157_v30 = vmul.f32 %v1562_v4, %v86_v18  ;;  %v158_v31 = vmul.f32 %v1562_v4, %v87_v19 }
  0x39   :  { %v308_v32 = vpack.c.bf16 %v259_v25, %v258_v21  ;;  %v291_v33 = vmax.f32 %v227_v26, 0.0  ;;  %v323_v34 = vpack.c.bf16 %v289_v20, %v288_v14  ;;  %v260_v38 = vmax.f32 %v196_v27, 0.0 }
  0x3a   :  { %v228_v35 = vadd.f32 %v1567_v5, %v157_v30  ;;  %v229_v36 = vadd.f32 %v1567_v5, %v158_v31  ;;  %v261_v39 = vmax.f32 %v197_v29, 0.0  ;;  %v1918_v5 = vld [vmem:[%s2313_s4] ss:$0 sm:$0xff] }
  0x3b   :  { %v324_v37 = vpack.c.bf16 %v291_v33, %v290_v28 }
  0x3c   :  { %v292_v40 = vmax.f32 %v228_v35, 0.0  ;;  %v293_v41 = vmax.f32 %v229_v36, 0.0  ;;  %v309_v4 = vpack.c.bf16 %v261_v39, %v260_v38 }
  0x3d   :  { %1472 = vmatmul.mubr.msk.bf16.gmra.mrb[24].mxu0 %vm327_vm1, %v307_v24 }
  0x3e   :  { %1475 = vmatprep.mubr.msk.bf16.mxu0 %vm327_vm1, %v308_v32  ;;  %v325_v42 = vpack.c.bf16 %v293_v41, %v292_v40 }
  0x3f   :  { %1504 = vmatmul.mubr.msk.bf16.gmra.mrb[24].mxu1 %vm327_vm1, %v323_v34 }
  0x40   :  { %1507 = vmatprep.mubr.msk.bf16.mxu1 %vm327_vm1, %v324_v37 }
  0x45   :  { %1476 = vmatmul.mubr.msk.bf16.gmra.mrb[28].mxu0 %vm327_vm1, %v309_v4 }
  0x47   :  { %1508 = vmatmul.mubr.msk.bf16.gmra.mrb[28].mxu1 %vm327_vm1, %v325_v42 }
  0xe0   :  { %v1449_v43 = vpop.f32.mrb[0].mxu0 }
  0xe1   :  { %v726_v45 = vmul.f32 %v1449_v43, %v1918_v5  ;;  %v462_v46 = vpop.f32.mrb[1].mxu0 }
  0xe2   :  { %v1481_v47 = vpop.f32.mrb[0].mxu1  ;;  %v724_v48 = vmul.f32 %v1918_v5, %v462_v46  ;;  %v1450_v49 = vpop.f32.mrb[2].mxu0 }
  0xe3   :  { %v797_v50 = vadd.f32 %v1923_v44, %v726_v45  ;;  %v758_v51 = vmul.f32 %v1481_v47, %v1918_v5  ;;  %v590_v52 = vpop.f32.mrb[1].mxu1  ;;  %v727_v53 = vmul.f32 %v1450_v49, %v1918_v5  ;;  %v465_v54 = vpop.f32.mrb[3].mxu0 }
  0xe4   :  { %v795_v55 = vadd.f32 %v1923_v44, %v724_v48  ;;  %v756_v56 = vmul.f32 %v1918_v5, %v590_v52  ;;  %v1482_v57 = vpop.f32.mrb[2].mxu1  ;;  %v725_v58 = vmul.f32 %v1918_v5, %v465_v54 }
  0xe5   :  { %v861_v59 = vmax.f32 %v797_v50, 0.0  ;;  %v829_v60 = vadd.f32 %v1923_v44, %v758_v51  ;;  %v798_v61 = vadd.f32 %v1923_v44, %v727_v53  ;;  %v759_v62 = vmul.f32 %v1482_v57, %v1918_v5  ;;  %v593_v63 = vpop.f32.mrb[3].mxu1 }
  0xe6   :  { %v859_v0 = vmax.f32 %v795_v55, 0.0  ;;  %v827_v1 = vadd.f32 %v1923_v44, %v756_v56  ;;  %v796_v2 = vadd.f32 %v1923_v44, %v725_v58  ;;  %v757_v3 = vmul.f32 %v1918_v5, %v593_v63 }
  0xe7   :  { %v1350_v6 = vpack.c.bf16 %v861_v59, %v861_v59  ;;  %v893_v7 = vmax.f32 %v829_v60, 0.0  ;;  %v862_v8 = vmax.f32 %v798_v61, 0.0  ;;  %v830_v9 = vadd.f32 %v1923_v44, %v759_v62 }
  0xe8   :  { %v1348_v10 = vpack.c.bf16 %v859_v0, %v859_v0  ;;  %v891_v11 = vmax.f32 %v827_v1, 0.0  ;;  %v860_v12 = vmax.f32 %v796_v2, 0.0  ;;  %v828_v13 = vadd.f32 %v1923_v44, %v757_v3  ;;  %v1453_v14 = vpop.f32.mrb[4].mxu0 }
  0xe9   :  { %1182 = vst.msk [vmem:[%s2315_s6 + $0x8] sm:$0xf] %vm1179_vm2, %v1350_v6  ;;  %v1382_v15 = vpack.c.bf16 %v893_v7, %v893_v7  ;;  %v1351_v16 = vpack.c.bf16 %v862_v8, %v862_v8  ;;  %v894_v17 = vmax.f32 %v830_v9, 0.0  ;;  %v730_v18 = vmul.f32 %v1453_v14, %v1918_v5  ;;  %v478_v19 = vpop.f32.mrb[5].mxu0 }
  0xea   :  { %1180 = vst.msk [vmem:[%s2315_s6] sm:$0xf] %vm1179_vm2, %v1348_v10  ;;  %v1380_v20 = vpack.c.bf16 %v891_v11, %v891_v11  ;;  %v1349_v21 = vpack.c.bf16 %v860_v12, %v860_v12  ;;  %v892_v22 = vmax.f32 %v828_v13, 0.0  ;;  %v1485_v23 = vpop.f32.mrb[4].mxu1  ;;  %v728_v24 = vmul.f32 %v1918_v5, %v478_v19  ;;  %v1454_v25 = vpop.f32.mrb[6].mxu0 }
  0xeb   :  { %1214 = vst.msk [vmem:[%s2315_s6 + $0x88] sm:$0xf] %vm1179_vm2, %v1382_v15  ;;  %1183 = vst.msk [vmem:[%s2315_s6 + $0xc] sm:$0xf] %vm1179_vm2, %v1351_v16  ;;  %v1383_v26 = vpack.c.bf16 %v894_v17, %v894_v17  ;;  %v801_v27 = vadd.f32 %v1923_v44, %v730_v18  ;;  %v762_v28 = vmul.f32 %v1485_v23, %v1918_v5  ;;  %v606_v29 = vpop.f32.mrb[5].mxu1  ;;  %v481_v31 = vpop.f32.mrb[7].mxu0 }
  0xec   :  { %v731_v30 = vmul.f32 %v1454_v25, %v1918_v5  ;;  %1212 = vst.msk [vmem:[%s2315_s6 + $0x80] sm:$0xf] %vm1179_vm2, %v1380_v20  ;;  %1181 = vst.msk [vmem:[%s2315_s6 + $0x4] sm:$0xf] %vm1179_vm2, %v1349_v21  ;;  %v1381_v32 = vpack.c.bf16 %v892_v22, %v892_v22  ;;  %v799_v33 = vadd.f32 %v1923_v44, %v728_v24  ;;  %v1486_v35 = vpop.f32.mrb[6].mxu1 }
  0xed   :  { %v760_v34 = vmul.f32 %v1918_v5, %v606_v29  ;;  %v729_v36 = vmul.f32 %v1918_v5, %v481_v31  ;;  %1215 = vst.msk [vmem:[%s2315_s6 + $0x8c] sm:$0xf] %vm1179_vm2, %v1383_v26  ;;  %v865_v37 = vmax.f32 %v801_v27, 0.0  ;;  %v833_v38 = vadd.f32 %v1923_v44, %v762_v28  ;;  %v609_v41 = vpop.f32.mrb[7].mxu1 }
  0xee   :  { %v802_v39 = vadd.f32 %v1923_v44, %v731_v30  ;;  %v763_v40 = vmul.f32 %v1486_v35, %v1918_v5  ;;  %1213 = vst.msk [vmem:[%s2315_s6 + $0x84] sm:$0xf] %vm1179_vm2, %v1381_v32  ;;  %v863_v4 = vmax.f32 %v799_v33, 0.0  ;;  %v761_v45 = vmul.f32 %v1918_v5, %v609_v41 }
  0xef   :  { %v831_v42 = vadd.f32 %v1923_v44, %v760_v34  ;;  %v800_v43 = vadd.f32 %v1923_v44, %v729_v36  ;;  %v1354_v46 = vpack.c.bf16 %v865_v37, %v865_v37  ;;  %v897_v47 = vmax.f32 %v833_v38, 0.0 }
  0xf0   :  { %v866_v48 = vmax.f32 %v802_v39, 0.0  ;;  %v834_v49 = vadd.f32 %v1923_v44, %v763_v40  ;;  %v1352_v50 = vpack.c.bf16 %v863_v4, %v863_v4  ;;  %v832_v53 = vadd.f32 %v1923_v44, %v761_v45  ;;  %v1457_v54 = vpop.f32.mrb[8].mxu0 }
  0xf1   :  { %v895_v51 = vmax.f32 %v831_v42, 0.0  ;;  %v864_v52 = vmax.f32 %v800_v43, 0.0  ;;  %1186 = vst.msk [vmem:[%s2315_s6 + $0x18] sm:$0xf] %vm1179_vm2, %v1354_v46  ;;  %v1386_v55 = vpack.c.bf16 %v897_v47, %v897_v47  ;;  %v734_v58 = vmul.f32 %v1457_v54, %v1918_v5  ;;  %v494_v59 = vpop.f32.mrb[9].mxu0 }
  0xf2   :  { %v1355_v56 = vpack.c.bf16 %v866_v48, %v866_v48  ;;  %v898_v57 = vmax.f32 %v834_v49, 0.0  ;;  %1184 = vst.msk [vmem:[%s2315_s6 + $0x10] sm:$0xf] %vm1179_vm2, %v1352_v50  ;;  %v896_v62 = vmax.f32 %v832_v53, 0.0  ;;  %v1489_v63 = vpop.f32.mrb[8].mxu1  ;;  %v732_v0 = vmul.f32 %v1918_v5, %v494_v59  ;;  %v1458_v1 = vpop.f32.mrb[10].mxu0 }
  0xf3   :  { %v1384_v60 = vpack.c.bf16 %v895_v51, %v895_v51  ;;  %v1353_v61 = vpack.c.bf16 %v864_v52, %v864_v52  ;;  %1218 = vst.msk [vmem:[%s2315_s6 + $0x98] sm:$0xf] %vm1179_vm2, %v1386_v55  ;;  %v805_v3 = vadd.f32 %v1923_v44, %v734_v58  ;;  %v766_v6 = vmul.f32 %v1489_v63, %v1918_v5  ;;  %v622_v7 = vpop.f32.mrb[9].mxu1  ;;  %v497_v9 = vpop.f32.mrb[11].mxu0 }
  0xf4   :  { %1187 = vst.msk [vmem:[%s2315_s6 + $0x1c] sm:$0xf] %vm1179_vm2, %v1355_v56  ;;  %v1387_v2 = vpack.c.bf16 %v898_v57, %v898_v57  ;;  %v735_v8 = vmul.f32 %v1458_v1, %v1918_v5  ;;  %v1385_v10 = vpack.c.bf16 %v896_v62, %v896_v62  ;;  %v803_v11 = vadd.f32 %v1923_v44, %v732_v0  ;;  %v1490_v13 = vpop.f32.mrb[10].mxu1 }
  0xf5   :  { %1216 = vst.msk [vmem:[%s2315_s6 + $0x90] sm:$0xf] %vm1179_vm2, %v1384_v60  ;;  %1185 = vst.msk [vmem:[%s2315_s6 + $0x14] sm:$0xf] %vm1179_vm2, %v1353_v61  ;;  %v764_v12 = vmul.f32 %v1918_v5, %v622_v7  ;;  %v733_v14 = vmul.f32 %v1918_v5, %v497_v9  ;;  %v869_v15 = vmax.f32 %v805_v3, 0.0  ;;  %v837_v16 = vadd.f32 %v1923_v44, %v766_v6  ;;  %v625_v19 = vpop.f32.mrb[11].mxu1 }
  0xf6   :  { %1219 = vst.msk [vmem:[%s2315_s6 + $0x9c] sm:$0xf] %vm1179_vm2, %v1387_v2  ;;  %v806_v17 = vadd.f32 %v1923_v44, %v735_v8  ;;  %v767_v18 = vmul.f32 %v1490_v13, %v1918_v5  ;;  %1217 = vst.msk [vmem:[%s2315_s6 + $0x94] sm:$0xf] %vm1179_vm2, %v1385_v10  ;;  %v867_v20 = vmax.f32 %v803_v11, 0.0  ;;  %v765_v23 = vmul.f32 %v1918_v5, %v625_v19 }
  0xf7   :  { %v835_v21 = vadd.f32 %v1923_v44, %v764_v12  ;;  %v804_v22 = vadd.f32 %v1923_v44, %v733_v14  ;;  %v1358_v24 = vpack.c.bf16 %v869_v15, %v869_v15  ;;  %v901_v25 = vmax.f32 %v837_v16, 0.0 }
  0xf8   :  { %v870_v26 = vmax.f32 %v806_v17, 0.0  ;;  %v838_v27 = vadd.f32 %v1923_v44, %v767_v18  ;;  %v1356_v28 = vpack.c.bf16 %v867_v20, %v867_v20  ;;  %v836_v31 = vadd.f32 %v1923_v44, %v765_v23  ;;  %v1461_v32 = vpop.f32.mrb[12].mxu0 }
  0xf9   :  { %v899_v29 = vmax.f32 %v835_v21, 0.0  ;;  %v868_v30 = vmax.f32 %v804_v22, 0.0  ;;  %1190 = vst.msk [vmem:[%s2315_s6 + $0x28] sm:$0xf] %vm1179_vm2, %v1358_v24  ;;  %v1390_v33 = vpack.c.bf16 %v901_v25, %v901_v25  ;;  %v738_v36 = vmul.f32 %v1461_v32, %v1918_v5  ;;  %v510_v37 = vpop.f32.mrb[13].mxu0 }
  0xfa   :  { %v1359_v34 = vpack.c.bf16 %v870_v26, %v870_v26  ;;  %v902_v35 = vmax.f32 %v838_v27, 0.0  ;;  %1188 = vst.msk [vmem:[%s2315_s6 + $0x20] sm:$0xf] %vm1179_vm2, %v1356_v28  ;;  %v900_v40 = vmax.f32 %v836_v31, 0.0  ;;  %v1493_v41 = vpop.f32.mrb[12].mxu1  ;;  %v736_v4 = vmul.f32 %v1918_v5, %v510_v37  ;;  %v1462_v42 = vpop.f32.mrb[14].mxu0 }
  0xfb   :  { %v1388_v38 = vpack.c.bf16 %v899_v29, %v899_v29  ;;  %v1357_v39 = vpack.c.bf16 %v868_v30, %v868_v30  ;;  %1222 = vst.msk [vmem:[%s2315_s6 + $0xa8] sm:$0xf] %vm1179_vm2, %v1390_v33  ;;  %v809_v45 = vadd.f32 %v1923_v44, %v738_v36  ;;  %v770_v46 = vmul.f32 %v1493_v41, %v1918_v5  ;;  %v638_v47 = vpop.f32.mrb[13].mxu1  ;;  %v513_v49 = vpop.f32.mrb[15].mxu0 }
  0xfc   :  { %1191 = vst.msk [vmem:[%s2315_s6 + $0x2c] sm:$0xf] %vm1179_vm2, %v1359_v34  ;;  %v1391_v43 = vpack.c.bf16 %v902_v35, %v902_v35  ;;  %v739_v48 = vmul.f32 %v1462_v42, %v1918_v5  ;;  %v1389_v50 = vpack.c.bf16 %v900_v40, %v900_v40  ;;  %v807_v51 = vadd.f32 %v1923_v44, %v736_v4  ;;  %v1494_v53 = vpop.f32.mrb[14].mxu1 }
  0xfd   :  { %1220 = vst.msk [vmem:[%s2315_s6 + $0xa0] sm:$0xf] %vm1179_vm2, %v1388_v38  ;;  %1189 = vst.msk [vmem:[%s2315_s6 + $0x24] sm:$0xf] %vm1179_vm2, %v1357_v39  ;;  %v768_v52 = vmul.f32 %v1918_v5, %v638_v47  ;;  %v737_v54 = vmul.f32 %v1918_v5, %v513_v49  ;;  %v873_v55 = vmax.f32 %v809_v45, 0.0  ;;  %v841_v56 = vadd.f32 %v1923_v44, %v770_v46  ;;  %v641_v59 = vpop.f32.mrb[15].mxu1 }
  0xfe   :  { %1223 = vst.msk [vmem:[%s2315_s6 + $0xac] sm:$0xf] %vm1179_vm2, %v1391_v43  ;;  %v810_v57 = vadd.f32 %v1923_v44, %v739_v48  ;;  %v771_v58 = vmul.f32 %v1494_v53, %v1918_v5  ;;  %1221 = vst.msk [vmem:[%s2315_s6 + $0xa4] sm:$0xf] %vm1179_vm2, %v1389_v50  ;;  %v871_v60 = vmax.f32 %v807_v51, 0.0  ;;  %v769_v63 = vmul.f32 %v1918_v5, %v641_v59 }
  0xff   :  { %v839_v61 = vadd.f32 %v1923_v44, %v768_v52  ;;  %v808_v62 = vadd.f32 %v1923_v44, %v737_v54  ;;  %v1362_v0 = vpack.c.bf16 %v873_v55, %v873_v55  ;;  %v905_v1 = vmax.f32 %v841_v56, 0.0 }
 0x100   :  { %v874_v2 = vmax.f32 %v810_v57, 0.0  ;;  %v842_v3 = vadd.f32 %v1923_v44, %v771_v58  ;;  %v1360_v6 = vpack.c.bf16 %v871_v60, %v871_v60  ;;  %v840_v9 = vadd.f32 %v1923_v44, %v769_v63  ;;  %v1465_v10 = vpop.f32.mrb[16].mxu0 }
 0x101   :  { %v903_v7 = vmax.f32 %v839_v61, 0.0  ;;  %v872_v8 = vmax.f32 %v808_v62, 0.0  ;;  %1194 = vst.msk [vmem:[%s2315_s6 + $0x38] sm:$0xf] %vm1179_vm2, %v1362_v0  ;;  %v1394_v11 = vpack.c.bf16 %v905_v1, %v905_v1  ;;  %v742_v14 = vmul.f32 %v1465_v10, %v1918_v5  ;;  %v526_v15 = vpop.f32.mrb[17].mxu0 }
 0x102   :  { %v1363_v12 = vpack.c.bf16 %v874_v2, %v874_v2  ;;  %v906_v13 = vmax.f32 %v842_v3, 0.0  ;;  %1192 = vst.msk [vmem:[%s2315_s6 + $0x30] sm:$0xf] %vm1179_vm2, %v1360_v6  ;;  %v904_v18 = vmax.f32 %v840_v9, 0.0  ;;  %v1497_v19 = vpop.f32.mrb[16].mxu1  ;;  %v740_v20 = vmul.f32 %v1918_v5, %v526_v15  ;;  %v1466_v21 = vpop.f32.mrb[18].mxu0 }
 0x103   :  { %v1392_v16 = vpack.c.bf16 %v903_v7, %v903_v7  ;;  %v1361_v17 = vpack.c.bf16 %v872_v8, %v872_v8  ;;  %1226 = vst.msk [vmem:[%s2315_s6 + $0xb8] sm:$0xf] %vm1179_vm2, %v1394_v11  ;;  %v813_v23 = vadd.f32 %v1923_v44, %v742_v14  ;;  %v774_v24 = vmul.f32 %v1497_v19, %v1918_v5  ;;  %v654_v25 = vpop.f32.mrb[17].mxu1  ;;  %v529_v27 = vpop.f32.mrb[19].mxu0 }
 0x104   :  { %1195 = vst.msk [vmem:[%s2315_s6 + $0x3c] sm:$0xf] %vm1179_vm2, %v1363_v12  ;;  %v1395_v22 = vpack.c.bf16 %v906_v13, %v906_v13  ;;  %v743_v26 = vmul.f32 %v1466_v21, %v1918_v5  ;;  %v1393_v28 = vpack.c.bf16 %v904_v18, %v904_v18  ;;  %v811_v29 = vadd.f32 %v1923_v44, %v740_v20  ;;  %v1498_v31 = vpop.f32.mrb[18].mxu1 }
 0x105   :  { %1224 = vst.msk [vmem:[%s2315_s6 + $0xb0] sm:$0xf] %vm1179_vm2, %v1392_v16  ;;  %1193 = vst.msk [vmem:[%s2315_s6 + $0x34] sm:$0xf] %vm1179_vm2, %v1361_v17  ;;  %v772_v30 = vmul.f32 %v1918_v5, %v654_v25  ;;  %v741_v32 = vmul.f32 %v1918_v5, %v529_v27  ;;  %v877_v33 = vmax.f32 %v813_v23, 0.0  ;;  %v845_v34 = vadd.f32 %v1923_v44, %v774_v24  ;;  %v657_v37 = vpop.f32.mrb[19].mxu1 }
 0x106   :  { %1227 = vst.msk [vmem:[%s2315_s6 + $0xbc] sm:$0xf] %vm1179_vm2, %v1395_v22  ;;  %v814_v35 = vadd.f32 %v1923_v44, %v743_v26  ;;  %v775_v36 = vmul.f32 %v1498_v31, %v1918_v5  ;;  %1225 = vst.msk [vmem:[%s2315_s6 + $0xb4] sm:$0xf] %vm1179_vm2, %v1393_v28  ;;  %v875_v38 = vmax.f32 %v811_v29, 0.0  ;;  %v773_v41 = vmul.f32 %v1918_v5, %v657_v37 }
 0x107   :  { %v843_v39 = vadd.f32 %v1923_v44, %v772_v30  ;;  %v812_v40 = vadd.f32 %v1923_v44, %v741_v32  ;;  %v1366_v4 = vpack.c.bf16 %v877_v33, %v877_v33  ;;  %v909_v42 = vmax.f32 %v845_v34, 0.0 }
 0x108   :  { %v878_v43 = vmax.f32 %v814_v35, 0.0  ;;  %v846_v45 = vadd.f32 %v1923_v44, %v775_v36  ;;  %v1364_v46 = vpack.c.bf16 %v875_v38, %v875_v38  ;;  %v844_v49 = vadd.f32 %v1923_v44, %v773_v41  ;;  %v1469_v50 = vpop.f32.mrb[20].mxu0 }
 0x109   :  { %v907_v47 = vmax.f32 %v843_v39, 0.0  ;;  %v876_v48 = vmax.f32 %v812_v40, 0.0  ;;  %1198 = vst.msk [vmem:[%s2315_s6 + $0x48] sm:$0xf] %vm1179_vm2, %v1366_v4  ;;  %v1398_v51 = vpack.c.bf16 %v909_v42, %v909_v42  ;;  %v746_v54 = vmul.f32 %v1469_v50, %v1918_v5  ;;  %v542_v55 = vpop.f32.mrb[21].mxu0 }
 0x10a   :  { %v1367_v52 = vpack.c.bf16 %v878_v43, %v878_v43  ;;  %v910_v53 = vmax.f32 %v846_v45, 0.0  ;;  %1196 = vst.msk [vmem:[%s2315_s6 + $0x40] sm:$0xf] %vm1179_vm2, %v1364_v46  ;;  %v908_v58 = vmax.f32 %v844_v49, 0.0  ;;  %v1501_v59 = vpop.f32.mrb[20].mxu1  ;;  %v744_v60 = vmul.f32 %v1918_v5, %v542_v55  ;;  %v1470_v61 = vpop.f32.mrb[22].mxu0 }
 0x10b   :  { %v1396_v56 = vpack.c.bf16 %v907_v47, %v907_v47  ;;  %v1365_v57 = vpack.c.bf16 %v876_v48, %v876_v48  ;;  %1230 = vst.msk [vmem:[%s2315_s6 + $0xc8] sm:$0xf] %vm1179_vm2, %v1398_v51  ;;  %v817_v63 = vadd.f32 %v1923_v44, %v746_v54  ;;  %v778_v0 = vmul.f32 %v1501_v59, %v1918_v5  ;;  %v670_v1 = vpop.f32.mrb[21].mxu1  ;;  %v545_v3 = vpop.f32.mrb[23].mxu0 }
 0x10c   :  { %1199 = vst.msk [vmem:[%s2315_s6 + $0x4c] sm:$0xf] %vm1179_vm2, %v1367_v52  ;;  %v1399_v62 = vpack.c.bf16 %v910_v53, %v910_v53  ;;  %v747_v2 = vmul.f32 %v1470_v61, %v1918_v5  ;;  %v1397_v6 = vpack.c.bf16 %v908_v58, %v908_v58  ;;  %v815_v7 = vadd.f32 %v1923_v44, %v744_v60  ;;  %v1502_v9 = vpop.f32.mrb[22].mxu1 }
 0x10d   :  { %1228 = vst.msk [vmem:[%s2315_s6 + $0xc0] sm:$0xf] %vm1179_vm2, %v1396_v56  ;;  %1197 = vst.msk [vmem:[%s2315_s6 + $0x44] sm:$0xf] %vm1179_vm2, %v1365_v57  ;;  %v776_v8 = vmul.f32 %v1918_v5, %v670_v1  ;;  %v745_v10 = vmul.f32 %v1918_v5, %v545_v3  ;;  %v881_v11 = vmax.f32 %v817_v63, 0.0  ;;  %v849_v12 = vadd.f32 %v1923_v44, %v778_v0  ;;  %v673_v15 = vpop.f32.mrb[23].mxu1 }
 0x10e   :  { %1231 = vst.msk [vmem:[%s2315_s6 + $0xcc] sm:$0xf] %vm1179_vm2, %v1399_v62  ;;  %v818_v13 = vadd.f32 %v1923_v44, %v747_v2  ;;  %v779_v14 = vmul.f32 %v1502_v9, %v1918_v5  ;;  %1229 = vst.msk [vmem:[%s2315_s6 + $0xc4] sm:$0xf] %vm1179_vm2, %v1397_v6  ;;  %v879_v16 = vmax.f32 %v815_v7, 0.0  ;;  %v777_v19 = vmul.f32 %v1918_v5, %v673_v15 }
 0x10f   :  { %v847_v17 = vadd.f32 %v1923_v44, %v776_v8  ;;  %v816_v18 = vadd.f32 %v1923_v44, %v745_v10  ;;  %v1370_v20 = vpack.c.bf16 %v881_v11, %v881_v11  ;;  %v913_v21 = vmax.f32 %v849_v12, 0.0 }
 0x110   :  { %v882_v22 = vmax.f32 %v818_v13, 0.0  ;;  %v850_v23 = vadd.f32 %v1923_v44, %v779_v14  ;;  %v1368_v24 = vpack.c.bf16 %v879_v16, %v879_v16  ;;  %v848_v27 = vadd.f32 %v1923_v44, %v777_v19  ;;  %v1473_v28 = vpop.f32.mrb[24].mxu0 }
 0x111   :  { %v911_v25 = vmax.f32 %v847_v17, 0.0  ;;  %v880_v26 = vmax.f32 %v816_v18, 0.0  ;;  %1202 = vst.msk [vmem:[%s2315_s6 + $0x58] sm:$0xf] %vm1179_vm2, %v1370_v20  ;;  %v1402_v29 = vpack.c.bf16 %v913_v21, %v913_v21  ;;  %v750_v32 = vmul.f32 %v1473_v28, %v1918_v5  ;;  %v558_v33 = vpop.f32.mrb[25].mxu0 }
 0x112   :  { %v1371_v30 = vpack.c.bf16 %v882_v22, %v882_v22  ;;  %v914_v31 = vmax.f32 %v850_v23, 0.0  ;;  %1200 = vst.msk [vmem:[%s2315_s6 + $0x50] sm:$0xf] %vm1179_vm2, %v1368_v24  ;;  %v912_v36 = vmax.f32 %v848_v27, 0.0  ;;  %v1505_v37 = vpop.f32.mrb[24].mxu1  ;;  %v748_v38 = vmul.f32 %v1918_v5, %v558_v33  ;;  %v1474_v39 = vpop.f32.mrb[26].mxu0 }
 0x113   :  { %v1400_v34 = vpack.c.bf16 %v911_v25, %v911_v25  ;;  %v1369_v35 = vpack.c.bf16 %v880_v26, %v880_v26  ;;  %1234 = vst.msk [vmem:[%s2315_s6 + $0xd8] sm:$0xf] %vm1179_vm2, %v1402_v29  ;;  %v821_v41 = vadd.f32 %v1923_v44, %v750_v32  ;;  %v782_v4 = vmul.f32 %v1505_v37, %v1918_v5  ;;  %v686_v42 = vpop.f32.mrb[25].mxu1  ;;  %v561_v45 = vpop.f32.mrb[27].mxu0 }
 0x114   :  { %1203 = vst.msk [vmem:[%s2315_s6 + $0x5c] sm:$0xf] %vm1179_vm2, %v1371_v30  ;;  %v1403_v40 = vpack.c.bf16 %v914_v31, %v914_v31  ;;  %v751_v43 = vmul.f32 %v1474_v39, %v1918_v5  ;;  %v1401_v46 = vpack.c.bf16 %v912_v36, %v912_v36  ;;  %v819_v47 = vadd.f32 %v1923_v44, %v748_v38  ;;  %v1506_v49 = vpop.f32.mrb[26].mxu1 }
 0x115   :  { %1232 = vst.msk [vmem:[%s2315_s6 + $0xd0] sm:$0xf] %vm1179_vm2, %v1400_v34  ;;  %1201 = vst.msk [vmem:[%s2315_s6 + $0x54] sm:$0xf] %vm1179_vm2, %v1369_v35  ;;  %v780_v48 = vmul.f32 %v1918_v5, %v686_v42  ;;  %v749_v50 = vmul.f32 %v1918_v5, %v561_v45  ;;  %v885_v51 = vmax.f32 %v821_v41, 0.0  ;;  %v853_v52 = vadd.f32 %v1923_v44, %v782_v4  ;;  %v689_v55 = vpop.f32.mrb[27].mxu1 }
 0x116   :  { %1235 = vst.msk [vmem:[%s2315_s6 + $0xdc] sm:$0xf] %vm1179_vm2, %v1403_v40  ;;  %v822_v53 = vadd.f32 %v1923_v44, %v751_v43  ;;  %v783_v54 = vmul.f32 %v1506_v49, %v1918_v5  ;;  %1233 = vst.msk [vmem:[%s2315_s6 + $0xd4] sm:$0xf] %vm1179_vm2, %v1401_v46  ;;  %v883_v56 = vmax.f32 %v819_v47, 0.0  ;;  %v781_v59 = vmul.f32 %v1918_v5, %v689_v55 }
 0x117   :  { %v851_v57 = vadd.f32 %v1923_v44, %v780_v48  ;;  %v820_v58 = vadd.f32 %v1923_v44, %v749_v50  ;;  %v1374_v60 = vpack.c.bf16 %v885_v51, %v885_v51  ;;  %v917_v61 = vmax.f32 %v853_v52, 0.0 }
 0x118   :  { %v886_v62 = vmax.f32 %v822_v53, 0.0  ;;  %v854_v63 = vadd.f32 %v1923_v44, %v783_v54  ;;  %v1372_v0 = vpack.c.bf16 %v883_v56, %v883_v56  ;;  %v852_v3 = vadd.f32 %v1923_v44, %v781_v59  ;;  %v1477_v6 = vpop.f32.mrb[28].mxu0 }
 0x119   :  { %v915_v1 = vmax.f32 %v851_v57, 0.0  ;;  %v884_v2 = vmax.f32 %v820_v58, 0.0  ;;  %1206 = vst.msk [vmem:[%s2315_s6 + $0x68] sm:$0xf] %vm1179_vm2, %v1374_v60  ;;  %v1406_v7 = vpack.c.bf16 %v917_v61, %v917_v61  ;;  %v754_v10 = vmul.f32 %v1477_v6, %v1918_v5  ;;  %v574_v11 = vpop.f32.mrb[29].mxu0 }
 0x11a   :  { %v1375_v8 = vpack.c.bf16 %v886_v62, %v886_v62  ;;  %v918_v9 = vmax.f32 %v854_v63, 0.0  ;;  %1204 = vst.msk [vmem:[%s2315_s6 + $0x60] sm:$0xf] %vm1179_vm2, %v1372_v0  ;;  %v916_v14 = vmax.f32 %v852_v3, 0.0  ;;  %v1509_v15 = vpop.f32.mrb[28].mxu1  ;;  %v752_v16 = vmul.f32 %v1918_v5, %v574_v11  ;;  %v1478_v17 = vpop.f32.mrb[30].mxu0 }
 0x11b   :  { %v1404_v12 = vpack.c.bf16 %v915_v1, %v915_v1  ;;  %v1373_v13 = vpack.c.bf16 %v884_v2, %v884_v2  ;;  %1238 = vst.msk [vmem:[%s2315_s6 + $0xe8] sm:$0xf] %vm1179_vm2, %v1406_v7  ;;  %v825_v19 = vadd.f32 %v1923_v44, %v754_v10  ;;  %v786_v20 = vmul.f32 %v1509_v15, %v1918_v5  ;;  %v702_v21 = vpop.f32.mrb[29].mxu1  ;;  %v577_v23 = vpop.f32.mrb[31].mxu0 }
 0x11c   :  { %1207 = vst.msk [vmem:[%s2315_s6 + $0x6c] sm:$0xf] %vm1179_vm2, %v1375_v8  ;;  %v1407_v18 = vpack.c.bf16 %v918_v9, %v918_v9  ;;  %v755_v22 = vmul.f32 %v1478_v17, %v1918_v5  ;;  %v1405_v24 = vpack.c.bf16 %v916_v14, %v916_v14  ;;  %v823_v25 = vadd.f32 %v1923_v44, %v752_v16  ;;  %v1510_v27 = vpop.f32.mrb[30].mxu1 }
 0x11d   :  { %1236 = vst.msk [vmem:[%s2315_s6 + $0xe0] sm:$0xf] %vm1179_vm2, %v1404_v12  ;;  %1205 = vst.msk [vmem:[%s2315_s6 + $0x64] sm:$0xf] %vm1179_vm2, %v1373_v13  ;;  %v784_v26 = vmul.f32 %v1918_v5, %v702_v21  ;;  %v753_v28 = vmul.f32 %v1918_v5, %v577_v23  ;;  %v889_v29 = vmax.f32 %v825_v19, 0.0  ;;  %v857_v30 = vadd.f32 %v1923_v44, %v786_v20  ;;  %v705_v33 = vpop.f32.mrb[31].mxu1 }
 0x11e   :  { %1239 = vst.msk [vmem:[%s2315_s6 + $0xec] sm:$0xf] %vm1179_vm2, %v1407_v18  ;;  %v826_v31 = vadd.f32 %v1923_v44, %v755_v22  ;;  %v787_v32 = vmul.f32 %v1510_v27, %v1918_v5  ;;  %1237 = vst.msk [vmem:[%s2315_s6 + $0xe4] sm:$0xf] %vm1179_vm2, %v1405_v24  ;;  %v887_v34 = vmax.f32 %v823_v25, 0.0  ;;  %v785_v37 = vmul.f32 %v1918_v5, %v705_v33 }
 0x11f   :  { %v855_v35 = vadd.f32 %v1923_v44, %v784_v26  ;;  %v824_v36 = vadd.f32 %v1923_v44, %v753_v28  ;;  %v1378_v38 = vpack.c.bf16 %v889_v29, %v889_v29  ;;  %v921_v39 = vmax.f32 %v857_v30, 0.0 }
 0x120   :  { %v890_v40 = vmax.f32 %v826_v31, 0.0  ;;  %v858_v41 = vadd.f32 %v1923_v44, %v787_v32  ;;  %v1376_v4 = vpack.c.bf16 %v887_v34, %v887_v34  ;;  %v856_v45 = vadd.f32 %v1923_v44, %v785_v37 }
 0x121   :  { %v919_v42 = vmax.f32 %v855_v35, 0.0  ;;  %v888_v43 = vmax.f32 %v824_v36, 0.0  ;;  %1210 = vst.msk [vmem:[%s2315_s6 + $0x78] sm:$0xf] %vm1179_vm2, %v1378_v38  ;;  %v1410_v46 = vpack.c.bf16 %v921_v39, %v921_v39 }
 0x122   :  { %v1379_v47 = vpack.c.bf16 %v890_v40, %v890_v40  ;;  %v922_v48 = vmax.f32 %v858_v41, 0.0  ;;  %1208 = vst.msk [vmem:[%s2315_s6 + $0x70] sm:$0xf] %vm1179_vm2, %v1376_v4  ;;  %v920_v50 = vmax.f32 %v856_v45, 0.0 }
 0x123   :  { %v1408_v5 = vpack.c.bf16 %v919_v42, %v919_v42  ;;  %v1377_v49 = vpack.c.bf16 %v888_v43, %v888_v43  ;;  %1242 = vst.msk [vmem:[%s2315_s6 + $0xf8] sm:$0xf] %vm1179_vm2, %v1410_v46 }
 0x124   :  { %1211 = vst.msk [vmem:[%s2315_s6 + $0x7c] sm:$0xf] %vm1179_vm2, %v1379_v47  ;;  %v1411_v44 = vpack.c.bf16 %v922_v48, %v922_v48  ;;  %v1409_v51 = vpack.c.bf16 %v920_v50, %v920_v50 }
 0x125   :  { %1240 = vst.msk [vmem:[%s2315_s6 + $0xf0] sm:$0xf] %vm1179_vm2, %v1408_v5  ;;  %1209 = vst.msk [vmem:[%s2315_s6 + $0x74] sm:$0xf] %vm1179_vm2, %v1377_v49 }
 0x126   :  { %1243 = vst.msk [vmem:[%s2315_s6 + $0xfc] sm:$0xf] %vm1179_vm2, %v1411_v44  ;;  %1241 = vst.msk [vmem:[%s2315_s6 + $0xf4] sm:$0xf] %vm1179_vm2, %v1409_v51 }

</bundles_post_ra>
